<compile_context>
chip_gen: v7x
topology: tpu7x:2x2x1
jax: 0.10.0
libtpu: 0.0.40
codegen_flags: <defaults>
</compile_context>

<pallas_src>
import jax
import jax.numpy as jnp
from jax.experimental import pallas as pl
from jax.experimental.pallas import tpu as pltpu

NUM_FEATURES = 652
DIM = 32

_VMEM = pl.BlockSpec(memory_space=pltpu.MemorySpace.VMEM)
_SMEM = pl.BlockSpec(memory_space=pltpu.MemorySpace.SMEM)


# --------------------------------------------------------------------------
# Fused Pallas kernel: 4 x (dual GINConv + cat-MLP + BN) + mean-pool + fc1..4
# --------------------------------------------------------------------------
def netgin_fused_kernel(eps_ref, a_ref, emb_ref, pool_ref,
                        w_pk_ref, w_bd_ref, w_m1_ref, w_32_ref,
                        b_64_ref, b_32_ref, out_ref):
    """Whole NetGIN forward for one (small) batch, fully VMEM-resident.

    eps_ref : SMEM (8,)             precomputed (1 + eps), per layer x branch
    a_ref   : VMEM (2N, 2N)         block-diag adjacency [A1 0; 0 A2]
    emb_ref : VMEM (2N, DIM)        [onehot@W1_1a ; onehot@W1_2a] (layer-1 Linear folded)
    pool_ref: VMEM (G, N)           mean-pool matrix (zero cols for padding nodes)
    w_pk_ref: VMEM (4, DIM, 2DIM)   lane-packed per-branch weights
    w_bd_ref: VMEM (3, 2DIM, 2DIM)  block-diag second-Linear weights, layers 2-4
    w_m1_ref: VMEM (4, 2DIM, DIM)   cat-MLP first Linear
    w_32_ref: VMEM (11, DIM, DIM)   [wm2*bn]x4, fc1 blocks x4, fc2, fc3, fc4(pad)
    b_64_ref: VMEM (7, 2DIM)        packed per-branch bias rows
    b_32_ref: VMEM (14, DIM)        remaining bias rows
    out_ref : VMEM (G, DIM)         prediction in column 0
    """
    n2 = a_ref.shape[0]
    n = n2 // 2
    a_bd = a_ref[...]                       # (2N, 2N)
    pool = pool_ref[...]                    # (G, N)

    def dot(x, y):
        return jnp.dot(x, y, preferred_element_type=jnp.float32)

    def b64(i):
        return b_64_ref[i:i + 1, :]         # (1, 64)

    def b32(i):
        return b_32_ref[i:i + 1, :]         # (1, 32)

    # Branch-validity mask for the (2N, 64) lane-packed intermediates:
    # branch 1 lives in the top-left block, branch 2 in the bottom-right one.
    row = jax.lax.broadcasted_iota(jnp.int32, (n2, 2 * DIM), 0)
    col = jax.lax.broadcasted_iota(jnp.int32, (n2, 2 * DIM), 1)
    topf = (row < n).astype(jnp.float32)
    leftf = (col < DIM).astype(jnp.float32)
    valid = topf * leftf + (1.0 - topf) * (1.0 - leftf)        # (2N, 64) 0/1
    tophalf = (jax.lax.broadcasted_iota(jnp.int32, (n2, 1), 0) < n
               ).astype(jnp.float32)                           # (2N, 1)

    def cat_mlp(yw, l):
        # yw: (2N, 64) branch output with valid TL / BR blocks -> x_r (N, DIM)
        ysel = yw * valid
        ycat = ysel[:n, :] + ysel[n:, :]                       # (N, 64) == [y1 | y2]
        m = jnp.maximum(dot(ycat, w_m1_ref[l]) + b32(2 + l), 0.0)
        return dot(m, w_32_ref[l]) + b32(6 + l)                # BN folded into w/b

    # ---- layer 1 (first Linear folded into the gathered embeddings) ----
    emb = emb_ref[...]                                         # (2N, DIM)
    epsc = eps_ref[1] + (eps_ref[0] - eps_ref[1]) * tophalf    # (2N, 1)
    z = epsc * emb + dot(a_bd, emb)
    ba = b32(1) + (b32(0) - b32(1)) * tophalf                  # per-branch first bias
    h = jnp.maximum(z + ba, 0.0)                               # (2N, DIM)
    yw = jnp.maximum(dot(h, w_pk_ref[0]) + b64(0), 0.0)        # (2N, 64)
    x_r = cat_mlp(yw, 0)                                       # (N, DIM)
    s = dot(x_r, w_32_ref[4])                                  # fc1-block fold

    # ---- layers 2..4 (unrolled at trace time) ----
    for l in range(1, 4):
        xdup = jnp.concatenate([x_r, x_r], axis=0)             # (2N, DIM)
        epsc = eps_ref[2 * l + 1] + (eps_ref[2 * l] - eps_ref[2 * l + 1]) * tophalf
        z = epsc * xdup + dot(a_bd, xdup)                      # (2N, DIM)
        hw = jnp.maximum(dot(z, w_pk_ref[l]) + b64(2 * l - 1), 0.0)   # (2N, 64)
        yw = jnp.maximum(dot(hw, w_bd_ref[l - 1]) + b64(2 * l), 0.0)  # (2N, 64)
        x_r = cat_mlp(yw, l)
        s = s + dot(x_r, w_32_ref[4 + l])

    # ---- readout: fc1 (folded, pooled once) + fc2..fc4 ----
    hg = jnp.maximum(dot(pool, s) + b32(10), 0.0)              # (G, DIM)
    hg = jnp.maximum(dot(hg, w_32_ref[8]) + b32(11), 0.0)
    hg = jnp.maximum(dot(hg, w_32_ref[9]) + b32(12), 0.0)
    out_ref[...] = dot(hg, w_32_ref[10]) + b32(13)             # column 0 = prediction


# --------------------------------------------------------------------------
# Wrapper
# --------------------------------------------------------------------------
def _round_up(x, m):
    return ((x + m - 1) // m) * m


def net_gin_forward(packed, labels_pad, a_bd, pool_mat):
    """packed: dict from pack_params(). Returns (num_graphs,) predictions."""
    g = pool_mat.shape[0]
    n_pad = pool_mat.shape[1]
    # one-hot(652) @ Linear == row gather of the first-layer weight tables
    emb = jnp.take(packed["emb_tables"], labels_pad, axis=1).reshape(2 * n_pad, DIM)

    # Advisory cost hint for the XLA scheduler (rough).
    flops = 2 * 4 * (2 * n_pad) * (2 * n_pad) * DIM
    flops += 2 * 4 * (2 * n_pad) * DIM * (2 * DIM)
    flops += 2 * 3 * (2 * n_pad) * (2 * DIM) * (2 * DIM)
    flops += 2 * 4 * n_pad * (2 * DIM) * DIM + 2 * 8 * n_pad * DIM * DIM
    flops += 2 * (g * n_pad * DIM + 3 * g * DIM * DIM)
    bytes_accessed = 4 * (a_bd.size + emb.size + pool_mat.size
                          + packed["w_pk"].size + packed["w_bd"].size
                          + packed["w_m1"].size + packed["w_32"].size
                          + packed["b_64"].size + packed["b_32"].size + g * DIM)

    out = pl.pallas_call(
        netgin_fused_kernel,
        out_shape=jax.ShapeDtypeStruct((g, DIM), jnp.float32),
        in_specs=[_SMEM] + [_VMEM] * 9,
        out_specs=_VMEM,
        cost_estimate=pl.CostEstimate(flops=flops, transcendentals=0,
                                      bytes_accessed=bytes_accessed),
    )(packed["eps1p"], a_bd, emb, pool_mat,
      packed["w_pk"], packed["w_bd"], packed["w_m1"], packed["w_32"],
      packed["b_64"], packed["b_32"])
    return out[:, 0]


def build_inputs(node_labels, edge_index_1, edge_index_2, batch, num_graphs):
    """Build padded, block-diagonal kernel inputs directly (no pad/concat chains)."""
    n_nodes = node_labels.shape[0]
    n_pad = _round_up(max(n_nodes, 8), 8)

    rows = jnp.concatenate([edge_index_1[1], edge_index_2[1] + n_pad])
    cols = jnp.concatenate([edge_index_1[0], edge_index_2[0] + n_pad])
    a_bd = jnp.zeros((2 * n_pad, 2 * n_pad), jnp.float32).at[rows, cols].add(1.0)

    labels_pad = jnp.zeros((n_pad,), jnp.int32).at[:n_nodes].set(node_labels)

    batch_pad = jnp.full((n_pad,), -1, jnp.int32).at[:n_nodes].set(batch)
    counts = jnp.maximum(jnp.bincount(batch, length=num_graphs).astype(jnp.float32), 1.0)
    pool = jax.nn.one_hot(batch_pad, num_graphs, dtype=jnp.float32).T / counts[:, None]
    return labels_pad, a_bd, pool


# --------------------------------------------------------------------------
# Deterministic parameter init (matches the PyTorch module structure)
# --------------------------------------------------------------------------
def _linear(key, fan_in, fan_out):
    kw, kb = jax.random.split(key)
    lim = 1.0 / jnp.sqrt(jnp.float32(fan_in))
    wgt = jax.random.uniform(kw, (fan_in, fan_out), jnp.float32, -lim, lim)
    bias = jax.random.uniform(kb, (1, fan_out), jnp.float32, -lim, lim)
    return wgt, bias


def init_layer(key, f_in, dim):
    ks = jax.random.split(key, 8)
    w11a, b11a = _linear(ks[0], f_in, dim)
    w11b, b11b = _linear(ks[1], dim, dim)
    w12a, b12a = _linear(ks[2], f_in, dim)
    w12b, b12b = _linear(ks[3], dim, dim)
    wm1, bm1 = _linear(ks[4], 2 * dim, dim)
    wm2, bm2 = _linear(ks[5], dim, dim)
    eps = 0.1 * jax.random.normal(ks[6], (2,), jnp.float32)
    kb = jax.random.split(ks[7], 4)
    gamma = 1.0 + 0.1 * jax.random.normal(kb[0], (dim,), jnp.float32)
    beta = 0.1 * jax.random.normal(kb[1], (dim,), jnp.float32)
    r_mean = 0.1 * jax.random.normal(kb[2], (dim,), jnp.float32)
    r_var = 0.5 + jax.random.uniform(kb[3], (dim,), jnp.float32)
    scale = gamma / jnp.sqrt(r_var + 1e-5)
    shift = beta - r_mean * scale
    return dict(eps=eps,
                w11a=w11a, b11a=b11a, w11b=w11b, b11b=b11b,
                w12a=w12a, b12a=b12a, w12b=w12b, b12b=b12b,
                wm1=wm1, bm1=bm1, wm2=wm2, bm2=bm2,
                bn_scale=scale.reshape(1, dim),
                bn_shift=shift.reshape(1, dim))


def init_params(key, dim):
    ks = jax.random.split(key, 9)
    params = {
        "layer1": init_layer(ks[0], NUM_FEATURES, dim),
        "layer2": init_layer(ks[1], dim, dim),
        "layer3": init_layer(ks[2], dim, dim),
        "layer4": init_layer(ks[3], dim, dim),
    }
    w1, b1 = _linear(ks[4], 4 * dim, dim)
    w2, b2 = _linear(ks[5], dim, dim)
    w3, b3 = _linear(ks[6], dim, dim)
    w4, b4 = _linear(ks[7], dim, 1)
    params["readout"] = dict(w1=w1, b1=b1, w2=w2, b2=b2,
                             w3=w3, b3=b3, w4=w4, b4=b4)
    return params


def pack_params(p):
    """Pack all parameters into the kernel's stacked layout (done once)."""
    d = DIM
    L = [p["layer1"], p["layer2"], p["layer3"], p["layer4"]]
    ro = p["readout"]

    def bn_fold(lay):
        return (lay["wm2"] * lay["bn_scale"],
                lay["bm2"] * lay["bn_scale"] + lay["bn_shift"])

    def blockdiag(a, b):
        z = jnp.zeros((d, d), jnp.float32)
        return jnp.concatenate([jnp.concatenate([a, z], axis=1),
                                jnp.concatenate([z, b], axis=1)], axis=0)

    # (4, DIM, 2*DIM): layer1 -> [w11b | w12b]; layers 2-4 -> [w11a | w12a]
    w_pk = jnp.stack(
        [jnp.concatenate([L[0]["w11b"], L[0]["w12b"]], axis=1)]
        + [jnp.concatenate([L[l]["w11a"], L[l]["w12a"]], axis=1) for l in range(1, 4)])
    # (3, 2*DIM, 2*DIM): block-diag second Linear, layers 2-4
    w_bd = jnp.stack([blockdiag(L[l]["w11b"], L[l]["w12b"]) for l in range(1, 4)])
    # (4, 2*DIM, DIM)
    w_m1 = jnp.stack([L[l]["wm1"] for l in range(4)])

    wm2f, bm2f = zip(*[bn_fold(L[l]) for l in range(4)])
    # (11, DIM, DIM): wm2(bn-folded) x4, fc1 blocks x4, fc2, fc3, fc4(pad)
    w_32 = jnp.stack(list(wm2f)
                     + [ro["w1"][i * d:(i + 1) * d] for i in range(4)]
                     + [ro["w2"], ro["w3"], jnp.pad(ro["w4"], ((0, 0), (0, d - 1)))])

    # (7, 2*DIM): row0 = [b11b|b12b] layer1; rows 2l-1 / 2l = [ab],[bb] layers 2-4
    b64_rows = [jnp.concatenate([L[0]["b11b"], L[0]["b12b"]], axis=1)]
    for l in range(1, 4):
        b64_rows += [jnp.concatenate([L[l]["b11a"], L[l]["b12a"]], axis=1),
                     jnp.concatenate([L[l]["b11b"], L[l]["b12b"]], axis=1)]
    b_64 = jnp.concatenate(b64_rows, axis=0)

    # (14, DIM): b11a_1, b12a_1, bm1 x4, bm2(folded) x4, bfc1..bfc4
    b_32 = jnp.concatenate(
        [L[0]["b11a"], L[0]["b12a"]]
        + [L[l]["bm1"] for l in range(4)]
        + list(bm2f)
        + [ro["b1"], ro["b2"], ro["b3"], jnp.pad(ro["b4"], ((0, 0), (0, d - 1)))],
        axis=0)

    eps1p = 1.0 + jnp.concatenate([L[l]["eps"] for l in range(4)])   # (8,)
    emb_tables = jnp.stack([L[0]["w11a"], L[0]["w12a"]], axis=0)     # (2, 652, DIM)
    return dict(eps1p=eps1p, emb_tables=emb_tables,
                w_pk=w_pk, w_bd=w_bd, w_m1=w_m1, w_32=w_32, b_64=b_64, b_32=b_32)


# --------------------------------------------------------------------------
# Pure-JAX reference (original one-hot path, unpacked params) + helpers
# --------------------------------------------------------------------------
def build_adjacency(edge_index, n):
    a = jnp.zeros((n, n), jnp.float32)
    return a.at[edge_index[1], edge_index[0]].add(1.0)


def build_pool_matrix(batch, num_graphs):
    counts = jnp.bincount(batch, length=num_graphs).astype(jnp.float32)
    p = jax.nn.one_hot(batch, num_graphs, dtype=jnp.float32).T
    return p / counts[:, None]


def net_gin_reference(params, node_labels, a1, a2, pool_mat):
    x = jax.nn.one_hot(node_labels, NUM_FEATURES, dtype=jnp.float32)

    def layer(p, xin):
        def branch(a, eps, wa, ba, wb, bb):
            z = (1.0 + eps) * xin + a @ xin
            h = jnp.maximum(z @ wa + ba, 0.0)
            return jnp.maximum(h @ wb + bb, 0.0)
        x1 = branch(a1, p["eps"][0], p["w11a"], p["b11a"], p["w11b"], p["b11b"])
        x2 = branch(a2, p["eps"][1], p["w12a"], p["b12a"], p["w12b"], p["b12b"])
        m = jnp.maximum(jnp.concatenate([x1, x2], -1) @ p["wm1"] + p["bm1"], 0.0)
        m = m @ p["wm2"] + p["bm2"]
        return m * p["bn_scale"] + p["bn_shift"]

    x1r = layer(params["layer1"], x)
    x2r = layer(params["layer2"], x1r)
    x3r = layer(params["layer3"], x2r)
    x4r = layer(params["layer4"], x3r)
    xc = jnp.concatenate([x1r, x2r, x3r, x4r], axis=-1)
    r = params["readout"]
    h = pool_mat @ xc
    h = jnp.maximum(h @ r["w1"] + r["b1"], 0.0)
    h = jnp.maximum(h @ r["w2"] + r["b2"], 0.0)
    h = jnp.maximum(h @ r["w3"] + r["b3"], 0.0)
    return (h @ r["w4"] + r["b4"]).reshape(-1)


if __name__ == "__main__":
    key = jax.random.PRNGKey(0)
    k_par, k_lab, k_e1, k_e2 = jax.random.split(key, 4)

    N = 16            # total nodes (2 graphs: 10 + 6 nodes)
    E = 40            # edges per edge_index
    NUM_GRAPHS = 2

    params = init_params(k_par, DIM)
    packed = pack_params(params)

    node_labels = jax.random.randint(k_lab, (N,), 0, NUM_FEATURES)
    edge_index_1 = jax.random.randint(k_e1, (2, E), 0, N)
    edge_index_2 = jax.random.randint(k_e2, (2, E), 0, N)
    batch = jnp.concatenate([jnp.zeros((10,), jnp.int32),
                             jnp.ones((6,), jnp.int32)])

    labels_pad, a_bd, pool_mat = build_inputs(
        node_labels, edge_index_1, edge_index_2, batch, NUM_GRAPHS)

    fwd = jax.jit(net_gin_forward)
    out = jax.block_until_ready(fwd(packed, labels_pad, a_bd, pool_mat))

    a1 = build_adjacency(edge_index_1, N)
    a2 = build_adjacency(edge_index_2, N)
    pool_ref_mat = build_pool_matrix(batch, NUM_GRAPHS)
    with jax.default_matmul_precision("highest"):
        ref = jax.block_until_ready(
            net_gin_reference(params, node_labels, a1, a2, pool_ref_mat))

    assert out.shape == (NUM_GRAPHS,)
    assert bool(jnp.all(jnp.isfinite(out)))
    assert bool(jnp.allclose(out, ref, rtol=1e-2, atol=1e-2))
    print("KERNEL_OK")
</pallas_src>

<mosaic_0001>
module attributes {stable_mosaic.version = 11 : i64} {
  func.func @netgin_fused_kernel(%arg0: memref<8xf32, #tpu.memory_space<smem>>, %arg1: memref<32x32xf32, #tpu.memory_space<vmem>>, %arg2: memref<32x32xf32, #tpu.memory_space<vmem>>, %arg3: memref<2x16xf32, #tpu.memory_space<vmem>>, %arg4: memref<4x32x64xf32, #tpu.memory_space<vmem>>, %arg5: memref<3x64x64xf32, #tpu.memory_space<vmem>>, %arg6: memref<4x64x32xf32, #tpu.memory_space<vmem>>, %arg7: memref<11x32x32xf32, #tpu.memory_space<vmem>>, %arg8: memref<7x64xf32, #tpu.memory_space<vmem>>, %arg9: memref<14x32xf32, #tpu.memory_space<vmem>>, %arg10: memref<2x32xf32, #tpu.memory_space<vmem>>) attributes {dimension_semantics = [], scalar_prefetch = 0 : i64, scratch_operands = 0 : i64, tpu.core_type = #tpu.core_type<tc>} {
    %c0 = arith.constant 0 : index
    %c0_0 = arith.constant 0 : index
    %0 = vector.load %arg1[%c0, %c0_0] : memref<32x32xf32, #tpu.memory_space<vmem>>, vector<32x32xf32>
    %c0_1 = arith.constant 0 : index
    %c0_2 = arith.constant 0 : index
    %1 = vector.load %arg3[%c0_1, %c0_2] : memref<2x16xf32, #tpu.memory_space<vmem>>, vector<2x16xf32>
    %2 = tpu.iota {dimensions = array<i32: 0>} : vector<32x64xi32>
    %3 = tpu.iota {dimensions = array<i32: 1>} : vector<32x64xi32>
    %c16_i32 = arith.constant 16 : i32
    %4 = vector.broadcast %c16_i32 : i32 to vector<32x64xi32>
    %5 = arith.cmpi slt, %2, %4 : vector<32x64xi32>
    %6 = arith.extui %5 : vector<32x64xi1> to vector<32x64xi32>
    %7 = arith.sitofp %6 : vector<32x64xi32> to vector<32x64xf32>
    %c32_i32 = arith.constant 32 : i32
    %8 = vector.broadcast %c32_i32 : i32 to vector<32x64xi32>
    %9 = arith.cmpi slt, %3, %8 : vector<32x64xi32>
    %10 = arith.extui %9 : vector<32x64xi1> to vector<32x64xi32>
    %11 = arith.sitofp %10 : vector<32x64xi32> to vector<32x64xf32>
    %12 = arith.mulf %7, %11 : vector<32x64xf32>
    %cst = arith.constant 1.000000e+00 : f32
    %13 = vector.broadcast %cst : f32 to vector<32x64xf32>
    %14 = arith.subf %13, %7 : vector<32x64xf32>
    %cst_3 = arith.constant 1.000000e+00 : f32
    %15 = vector.broadcast %cst_3 : f32 to vector<32x64xf32>
    %16 = arith.subf %15, %11 : vector<32x64xf32>
    %17 = arith.mulf %14, %16 : vector<32x64xf32>
    %18 = arith.addf %12, %17 : vector<32x64xf32>
    %19 = tpu.iota {dimensions = array<i32: 0>} : vector<32x1xi32>
    %c16_i32_4 = arith.constant 16 : i32
    %20 = vector.broadcast %c16_i32_4 : i32 to vector<32x1xi32>
    %21 = arith.cmpi slt, %19, %20 : vector<32x1xi32>
    %22 = arith.extui %21 : vector<32x1xi1> to vector<32x1xi32>
    %23 = arith.sitofp %22 : vector<32x1xi32> to vector<32x1xf32>
    %c0_5 = arith.constant 0 : index
    %c0_6 = arith.constant 0 : index
    %24 = vector.load %arg2[%c0_5, %c0_6] : memref<32x32xf32, #tpu.memory_space<vmem>>, vector<32x32xf32>
    %c1 = arith.constant 1 : index
    %25 = memref.load %arg0[%c1] : memref<8xf32, #tpu.memory_space<smem>>
    %c0_7 = arith.constant 0 : index
    %26 = memref.load %arg0[%c0_7] : memref<8xf32, #tpu.memory_space<smem>>
    %c1_8 = arith.constant 1 : index
    %27 = memref.load %arg0[%c1_8] : memref<8xf32, #tpu.memory_space<smem>>
    %28 = arith.subf %26, %27 : f32
    %29 = vector.broadcast %28 : f32 to vector<32x1xf32>
    %30 = arith.mulf %29, %23 : vector<32x1xf32>
    %31 = vector.broadcast %25 : f32 to vector<32x1xf32>
    %32 = arith.addf %31, %30 : vector<32x1xf32>
    %33 = vector.broadcast %32 : vector<32x1xf32> to vector<32x32xf32>
    %34 = arith.mulf %33, %24 : vector<32x32xf32>
    %cst_9 = arith.constant dense<0.000000e+00> : vector<32x32xf32>
    %35 = tpu.matmul %0, %24, %cst_9 {dimension_numbers = #tpu.dot_dimension_numbers<[1], [0], [0], [1], [0, 0, 1, 1], [], []>} : vector<32x32xf32>, vector<32x32xf32>, vector<32x32xf32> -> vector<32x32xf32>
    %36 = arith.addf %34, %35 : vector<32x32xf32>
    %c1_10 = arith.constant 1 : index
    %c0_11 = arith.constant 0 : index
    %37 = vector.load %arg9[%c1_10, %c0_11] : memref<14x32xf32, #tpu.memory_space<vmem>>, vector<1x32xf32>
    %c0_12 = arith.constant 0 : index
    %c0_13 = arith.constant 0 : index
    %38 = vector.load %arg9[%c0_12, %c0_13] : memref<14x32xf32, #tpu.memory_space<vmem>>, vector<1x32xf32>
    %c1_14 = arith.constant 1 : index
    %c0_15 = arith.constant 0 : index
    %39 = vector.load %arg9[%c1_14, %c0_15] : memref<14x32xf32, #tpu.memory_space<vmem>>, vector<1x32xf32>
    %40 = arith.subf %38, %39 : vector<1x32xf32>
    %41 = vector.broadcast %40 : vector<1x32xf32> to vector<32x32xf32>
    %42 = vector.broadcast %23 : vector<32x1xf32> to vector<32x32xf32>
    %43 = arith.mulf %41, %42 : vector<32x32xf32>
    %44 = vector.broadcast %37 : vector<1x32xf32> to vector<32x32xf32>
    %45 = arith.addf %44, %43 : vector<32x32xf32>
    %46 = arith.addf %36, %45 : vector<32x32xf32>
    %cst_16 = arith.constant 0.000000e+00 : f32
    %47 = vector.broadcast %cst_16 : f32 to vector<32x32xf32>
    %48 = arith.maximumf %46, %47 : vector<32x32xf32>
    %c0_17 = arith.constant 0 : index
    %c0_18 = arith.constant 0 : index
    %c0_19 = arith.constant 0 : index
    %49 = vector.load %arg4[%c0_17, %c0_18, %c0_19] : memref<4x32x64xf32, #tpu.memory_space<vmem>>, vector<1x32x64xf32>
    %50 = vector.shape_cast %49 : vector<1x32x64xf32> to vector<32x64xf32>
    %cst_20 = arith.constant dense<0.000000e+00> : vector<32x64xf32>
    %51 = tpu.matmul %48, %50, %cst_20 {dimension_numbers = #tpu.dot_dimension_numbers<[1], [0], [0], [1], [0, 0, 1, 1], [], []>} : vector<32x32xf32>, vector<32x64xf32>, vector<32x64xf32> -> vector<32x64xf32>
    %c0_21 = arith.constant 0 : index
    %c0_22 = arith.constant 0 : index
    %52 = vector.load %arg8[%c0_21, %c0_22] : memref<7x64xf32, #tpu.memory_space<vmem>>, vector<1x64xf32>
    %53 = vector.broadcast %52 : vector<1x64xf32> to vector<32x64xf32>
    %54 = arith.addf %51, %53 : vector<32x64xf32>
    %cst_23 = arith.constant 0.000000e+00 : f32
    %55 = vector.broadcast %cst_23 : f32 to vector<32x64xf32>
    %56 = arith.maximumf %54, %55 : vector<32x64xf32>
    %57 = arith.mulf %56, %18 : vector<32x64xf32>
    %58 = vector.extract_strided_slice %57 {offsets = [0, 0], sizes = [16, 64], strides = [1, 1]} : vector<32x64xf32> to vector<16x64xf32>
    %59 = vector.extract_strided_slice %57 {offsets = [16, 0], sizes = [16, 64], strides = [1, 1]} : vector<32x64xf32> to vector<16x64xf32>
    %60 = arith.addf %58, %59 : vector<16x64xf32>
    %c0_24 = arith.constant 0 : index
    %c0_25 = arith.constant 0 : index
    %c0_26 = arith.constant 0 : index
    %61 = vector.load %arg6[%c0_24, %c0_25, %c0_26] : memref<4x64x32xf32, #tpu.memory_space<vmem>>, vector<1x64x32xf32>
    %62 = vector.shape_cast %61 : vector<1x64x32xf32> to vector<64x32xf32>
    %cst_27 = arith.constant dense<0.000000e+00> : vector<16x32xf32>
    %63 = tpu.matmul %60, %62, %cst_27 {dimension_numbers = #tpu.dot_dimension_numbers<[1], [0], [0], [1], [0, 0, 1, 1], [], []>} : vector<16x64xf32>, vector<64x32xf32>, vector<16x32xf32> -> vector<16x32xf32>
    %c2 = arith.constant 2 : index
    %c0_28 = arith.constant 0 : index
    %64 = vector.load %arg9[%c2, %c0_28] : memref<14x32xf32, #tpu.memory_space<vmem>>, vector<1x32xf32>
    %65 = vector.broadcast %64 : vector<1x32xf32> to vector<16x32xf32>
    %66 = arith.addf %63, %65 : vector<16x32xf32>
    %cst_29 = arith.constant 0.000000e+00 : f32
    %67 = vector.broadcast %cst_29 : f32 to vector<16x32xf32>
    %68 = arith.maximumf %66, %67 : vector<16x32xf32>
    %c0_30 = arith.constant 0 : index
    %c0_31 = arith.constant 0 : index
    %c0_32 = arith.constant 0 : index
    %69 = vector.load %arg7[%c0_30, %c0_31, %c0_32] : memref<11x32x32xf32, #tpu.memory_space<vmem>>, vector<1x32x32xf32>
    %70 = vector.shape_cast %69 : vector<1x32x32xf32> to vector<32x32xf32>
    %cst_33 = arith.constant dense<0.000000e+00> : vector<16x32xf32>
    %71 = tpu.matmul %68, %70, %cst_33 {dimension_numbers = #tpu.dot_dimension_numbers<[1], [0], [0], [1], [0, 0, 1, 1], [], []>} : vector<16x32xf32>, vector<32x32xf32>, vector<16x32xf32> -> vector<16x32xf32>
    %c6 = arith.constant 6 : index
    %c0_34 = arith.constant 0 : index
    %72 = vector.load %arg9[%c6, %c0_34] : memref<14x32xf32, #tpu.memory_space<vmem>>, vector<1x32xf32>
    %73 = vector.broadcast %72 : vector<1x32xf32> to vector<16x32xf32>
    %74 = arith.addf %71, %73 : vector<16x32xf32>
    %c4 = arith.constant 4 : index
    %c0_35 = arith.constant 0 : index
    %c0_36 = arith.constant 0 : index
    %75 = vector.load %arg7[%c4, %c0_35, %c0_36] : memref<11x32x32xf32, #tpu.memory_space<vmem>>, vector<1x32x32xf32>
    %76 = vector.shape_cast %75 : vector<1x32x32xf32> to vector<32x32xf32>
    %cst_37 = arith.constant dense<0.000000e+00> : vector<16x32xf32>
    %77 = tpu.matmul %74, %76, %cst_37 {dimension_numbers = #tpu.dot_dimension_numbers<[1], [0], [0], [1], [0, 0, 1, 1], [], []>} : vector<16x32xf32>, vector<32x32xf32>, vector<16x32xf32> -> vector<16x32xf32>
    %78 = tpu.concatenate %74, %74 in 0 : vector<16x32xf32>, vector<16x32xf32> -> vector<32x32xf32>
    %c3 = arith.constant 3 : index
    %79 = memref.load %arg0[%c3] : memref<8xf32, #tpu.memory_space<smem>>
    %c2_38 = arith.constant 2 : index
    %80 = memref.load %arg0[%c2_38] : memref<8xf32, #tpu.memory_space<smem>>
    %c3_39 = arith.constant 3 : index
    %81 = memref.load %arg0[%c3_39] : memref<8xf32, #tpu.memory_space<smem>>
    %82 = arith.subf %80, %81 : f32
    %83 = vector.broadcast %82 : f32 to vector<32x1xf32>
    %84 = arith.mulf %83, %23 : vector<32x1xf32>
    %85 = vector.broadcast %79 : f32 to vector<32x1xf32>
    %86 = arith.addf %85, %84 : vector<32x1xf32>
    %87 = vector.broadcast %86 : vector<32x1xf32> to vector<32x32xf32>
    %88 = arith.mulf %87, %78 : vector<32x32xf32>
    %cst_40 = arith.constant dense<0.000000e+00> : vector<32x32xf32>
    %89 = tpu.matmul %0, %78, %cst_40 {dimension_numbers = #tpu.dot_dimension_numbers<[1], [0], [0], [1], [0, 0, 1, 1], [], []>} : vector<32x32xf32>, vector<32x32xf32>, vector<32x32xf32> -> vector<32x32xf32>
    %90 = arith.addf %88, %89 : vector<32x32xf32>
    %c1_41 = arith.constant 1 : index
    %c0_42 = arith.constant 0 : index
    %c0_43 = arith.constant 0 : index
    %91 = vector.load %arg4[%c1_41, %c0_42, %c0_43] : memref<4x32x64xf32, #tpu.memory_space<vmem>>, vector<1x32x64xf32>
    %92 = vector.shape_cast %91 : vector<1x32x64xf32> to vector<32x64xf32>
    %cst_44 = arith.constant dense<0.000000e+00> : vector<32x64xf32>
    %93 = tpu.matmul %90, %92, %cst_44 {dimension_numbers = #tpu.dot_dimension_numbers<[1], [0], [0], [1], [0, 0, 1, 1], [], []>} : vector<32x32xf32>, vector<32x64xf32>, vector<32x64xf32> -> vector<32x64xf32>
    %c1_45 = arith.constant 1 : index
    %c0_46 = arith.constant 0 : index
    %94 = vector.load %arg8[%c1_45, %c0_46] : memref<7x64xf32, #tpu.memory_space<vmem>>, vector<1x64xf32>
    %95 = vector.broadcast %94 : vector<1x64xf32> to vector<32x64xf32>
    %96 = arith.addf %93, %95 : vector<32x64xf32>
    %cst_47 = arith.constant 0.000000e+00 : f32
    %97 = vector.broadcast %cst_47 : f32 to vector<32x64xf32>
    %98 = arith.maximumf %96, %97 : vector<32x64xf32>
    %c0_48 = arith.constant 0 : index
    %c0_49 = arith.constant 0 : index
    %c0_50 = arith.constant 0 : index
    %99 = vector.load %arg5[%c0_48, %c0_49, %c0_50] : memref<3x64x64xf32, #tpu.memory_space<vmem>>, vector<1x64x64xf32>
    %100 = vector.shape_cast %99 : vector<1x64x64xf32> to vector<64x64xf32>
    %cst_51 = arith.constant dense<0.000000e+00> : vector<32x64xf32>
    %101 = tpu.matmul %98, %100, %cst_51 {dimension_numbers = #tpu.dot_dimension_numbers<[1], [0], [0], [1], [0, 0, 1, 1], [], []>} : vector<32x64xf32>, vector<64x64xf32>, vector<32x64xf32> -> vector<32x64xf32>
    %c2_52 = arith.constant 2 : index
    %c0_53 = arith.constant 0 : index
    %102 = vector.load %arg8[%c2_52, %c0_53] : memref<7x64xf32, #tpu.memory_space<vmem>>, vector<1x64xf32>
    %103 = vector.broadcast %102 : vector<1x64xf32> to vector<32x64xf32>
    %104 = arith.addf %101, %103 : vector<32x64xf32>
    %cst_54 = arith.constant 0.000000e+00 : f32
    %105 = vector.broadcast %cst_54 : f32 to vector<32x64xf32>
    %106 = arith.maximumf %104, %105 : vector<32x64xf32>
    %107 = arith.mulf %106, %18 : vector<32x64xf32>
    %108 = vector.extract_strided_slice %107 {offsets = [0, 0], sizes = [16, 64], strides = [1, 1]} : vector<32x64xf32> to vector<16x64xf32>
    %109 = vector.extract_strided_slice %107 {offsets = [16, 0], sizes = [16, 64], strides = [1, 1]} : vector<32x64xf32> to vector<16x64xf32>
    %110 = arith.addf %108, %109 : vector<16x64xf32>
    %c1_55 = arith.constant 1 : index
    %c0_56 = arith.constant 0 : index
    %c0_57 = arith.constant 0 : index
    %111 = vector.load %arg6[%c1_55, %c0_56, %c0_57] : memref<4x64x32xf32, #tpu.memory_space<vmem>>, vector<1x64x32xf32>
    %112 = vector.shape_cast %111 : vector<1x64x32xf32> to vector<64x32xf32>
    %cst_58 = arith.constant dense<0.000000e+00> : vector<16x32xf32>
    %113 = tpu.matmul %110, %112, %cst_58 {dimension_numbers = #tpu.dot_dimension_numbers<[1], [0], [0], [1], [0, 0, 1, 1], [], []>} : vector<16x64xf32>, vector<64x32xf32>, vector<16x32xf32> -> vector<16x32xf32>
    %c3_59 = arith.constant 3 : index
    %c0_60 = arith.constant 0 : index
    %114 = vector.load %arg9[%c3_59, %c0_60] : memref<14x32xf32, #tpu.memory_space<vmem>>, vector<1x32xf32>
    %115 = vector.broadcast %114 : vector<1x32xf32> to vector<16x32xf32>
    %116 = arith.addf %113, %115 : vector<16x32xf32>
    %cst_61 = arith.constant 0.000000e+00 : f32
    %117 = vector.broadcast %cst_61 : f32 to vector<16x32xf32>
    %118 = arith.maximumf %116, %117 : vector<16x32xf32>
    %c1_62 = arith.constant 1 : index
    %c0_63 = arith.constant 0 : index
    %c0_64 = arith.constant 0 : index
    %119 = vector.load %arg7[%c1_62, %c0_63, %c0_64] : memref<11x32x32xf32, #tpu.memory_space<vmem>>, vector<1x32x32xf32>
    %120 = vector.shape_cast %119 : vector<1x32x32xf32> to vector<32x32xf32>
    %cst_65 = arith.constant dense<0.000000e+00> : vector<16x32xf32>
    %121 = tpu.matmul %118, %120, %cst_65 {dimension_numbers = #tpu.dot_dimension_numbers<[1], [0], [0], [1], [0, 0, 1, 1], [], []>} : vector<16x32xf32>, vector<32x32xf32>, vector<16x32xf32> -> vector<16x32xf32>
    %c7 = arith.constant 7 : index
    %c0_66 = arith.constant 0 : index
    %122 = vector.load %arg9[%c7, %c0_66] : memref<14x32xf32, #tpu.memory_space<vmem>>, vector<1x32xf32>
    %123 = vector.broadcast %122 : vector<1x32xf32> to vector<16x32xf32>
    %124 = arith.addf %121, %123 : vector<16x32xf32>
    %c5 = arith.constant 5 : index
    %c0_67 = arith.constant 0 : index
    %c0_68 = arith.constant 0 : index
    %125 = vector.load %arg7[%c5, %c0_67, %c0_68] : memref<11x32x32xf32, #tpu.memory_space<vmem>>, vector<1x32x32xf32>
    %126 = vector.shape_cast %125 : vector<1x32x32xf32> to vector<32x32xf32>
    %cst_69 = arith.constant dense<0.000000e+00> : vector<16x32xf32>
    %127 = tpu.matmul %124, %126, %cst_69 {dimension_numbers = #tpu.dot_dimension_numbers<[1], [0], [0], [1], [0, 0, 1, 1], [], []>} : vector<16x32xf32>, vector<32x32xf32>, vector<16x32xf32> -> vector<16x32xf32>
    %128 = arith.addf %77, %127 : vector<16x32xf32>
    %129 = tpu.concatenate %124, %124 in 0 : vector<16x32xf32>, vector<16x32xf32> -> vector<32x32xf32>
    %c5_70 = arith.constant 5 : index
    %130 = memref.load %arg0[%c5_70] : memref<8xf32, #tpu.memory_space<smem>>
    %c4_71 = arith.constant 4 : index
    %131 = memref.load %arg0[%c4_71] : memref<8xf32, #tpu.memory_space<smem>>
    %c5_72 = arith.constant 5 : index
    %132 = memref.load %arg0[%c5_72] : memref<8xf32, #tpu.memory_space<smem>>
    %133 = arith.subf %131, %132 : f32
    %134 = vector.broadcast %133 : f32 to vector<32x1xf32>
    %135 = arith.mulf %134, %23 : vector<32x1xf32>
    %136 = vector.broadcast %130 : f32 to vector<32x1xf32>
    %137 = arith.addf %136, %135 : vector<32x1xf32>
    %138 = vector.broadcast %137 : vector<32x1xf32> to vector<32x32xf32>
    %139 = arith.mulf %138, %129 : vector<32x32xf32>
    %cst_73 = arith.constant dense<0.000000e+00> : vector<32x32xf32>
    %140 = tpu.matmul %0, %129, %cst_73 {dimension_numbers = #tpu.dot_dimension_numbers<[1], [0], [0], [1], [0, 0, 1, 1], [], []>} : vector<32x32xf32>, vector<32x32xf32>, vector<32x32xf32> -> vector<32x32xf32>
    %141 = arith.addf %139, %140 : vector<32x32xf32>
    %c2_74 = arith.constant 2 : index
    %c0_75 = arith.constant 0 : index
    %c0_76 = arith.constant 0 : index
    %142 = vector.load %arg4[%c2_74, %c0_75, %c0_76] : memref<4x32x64xf32, #tpu.memory_space<vmem>>, vector<1x32x64xf32>
    %143 = vector.shape_cast %142 : vector<1x32x64xf32> to vector<32x64xf32>
    %cst_77 = arith.constant dense<0.000000e+00> : vector<32x64xf32>
    %144 = tpu.matmul %141, %143, %cst_77 {dimension_numbers = #tpu.dot_dimension_numbers<[1], [0], [0], [1], [0, 0, 1, 1], [], []>} : vector<32x32xf32>, vector<32x64xf32>, vector<32x64xf32> -> vector<32x64xf32>
    %c3_78 = arith.constant 3 : index
    %c0_79 = arith.constant 0 : index
    %145 = vector.load %arg8[%c3_78, %c0_79] : memref<7x64xf32, #tpu.memory_space<vmem>>, vector<1x64xf32>
    %146 = vector.broadcast %145 : vector<1x64xf32> to vector<32x64xf32>
    %147 = arith.addf %144, %146 : vector<32x64xf32>
    %cst_80 = arith.constant 0.000000e+00 : f32
    %148 = vector.broadcast %cst_80 : f32 to vector<32x64xf32>
    %149 = arith.maximumf %147, %148 : vector<32x64xf32>
    %c1_81 = arith.constant 1 : index
    %c0_82 = arith.constant 0 : index
    %c0_83 = arith.constant 0 : index
    %150 = vector.load %arg5[%c1_81, %c0_82, %c0_83] : memref<3x64x64xf32, #tpu.memory_space<vmem>>, vector<1x64x64xf32>
    %151 = vector.shape_cast %150 : vector<1x64x64xf32> to vector<64x64xf32>
    %cst_84 = arith.constant dense<0.000000e+00> : vector<32x64xf32>
    %152 = tpu.matmul %149, %151, %cst_84 {dimension_numbers = #tpu.dot_dimension_numbers<[1], [0], [0], [1], [0, 0, 1, 1], [], []>} : vector<32x64xf32>, vector<64x64xf32>, vector<32x64xf32> -> vector<32x64xf32>
    %c4_85 = arith.constant 4 : index
    %c0_86 = arith.constant 0 : index
    %153 = vector.load %arg8[%c4_85, %c0_86] : memref<7x64xf32, #tpu.memory_space<vmem>>, vector<1x64xf32>
    %154 = vector.broadcast %153 : vector<1x64xf32> to vector<32x64xf32>
    %155 = arith.addf %152, %154 : vector<32x64xf32>
    %cst_87 = arith.constant 0.000000e+00 : f32
    %156 = vector.broadcast %cst_87 : f32 to vector<32x64xf32>
    %157 = arith.maximumf %155, %156 : vector<32x64xf32>
    %158 = arith.mulf %157, %18 : vector<32x64xf32>
    %159 = vector.extract_strided_slice %158 {offsets = [0, 0], sizes = [16, 64], strides = [1, 1]} : vector<32x64xf32> to vector<16x64xf32>
    %160 = vector.extract_strided_slice %158 {offsets = [16, 0], sizes = [16, 64], strides = [1, 1]} : vector<32x64xf32> to vector<16x64xf32>
    %161 = arith.addf %159, %160 : vector<16x64xf32>
    %c2_88 = arith.constant 2 : index
    %c0_89 = arith.constant 0 : index
    %c0_90 = arith.constant 0 : index
    %162 = vector.load %arg6[%c2_88, %c0_89, %c0_90] : memref<4x64x32xf32, #tpu.memory_space<vmem>>, vector<1x64x32xf32>
    %163 = vector.shape_cast %162 : vector<1x64x32xf32> to vector<64x32xf32>
    %cst_91 = arith.constant dense<0.000000e+00> : vector<16x32xf32>
    %164 = tpu.matmul %161, %163, %cst_91 {dimension_numbers = #tpu.dot_dimension_numbers<[1], [0], [0], [1], [0, 0, 1, 1], [], []>} : vector<16x64xf32>, vector<64x32xf32>, vector<16x32xf32> -> vector<16x32xf32>
    %c4_92 = arith.constant 4 : index
    %c0_93 = arith.constant 0 : index
    %165 = vector.load %arg9[%c4_92, %c0_93] : memref<14x32xf32, #tpu.memory_space<vmem>>, vector<1x32xf32>
    %166 = vector.broadcast %165 : vector<1x32xf32> to vector<16x32xf32>
    %167 = arith.addf %164, %166 : vector<16x32xf32>
    %cst_94 = arith.constant 0.000000e+00 : f32
    %168 = vector.broadcast %cst_94 : f32 to vector<16x32xf32>
    %169 = arith.maximumf %167, %168 : vector<16x32xf32>
    %c2_95 = arith.constant 2 : index
    %c0_96 = arith.constant 0 : index
    %c0_97 = arith.constant 0 : index
    %170 = vector.load %arg7[%c2_95, %c0_96, %c0_97] : memref<11x32x32xf32, #tpu.memory_space<vmem>>, vector<1x32x32xf32>
    %171 = vector.shape_cast %170 : vector<1x32x32xf32> to vector<32x32xf32>
    %cst_98 = arith.constant dense<0.000000e+00> : vector<16x32xf32>
    %172 = tpu.matmul %169, %171, %cst_98 {dimension_numbers = #tpu.dot_dimension_numbers<[1], [0], [0], [1], [0, 0, 1, 1], [], []>} : vector<16x32xf32>, vector<32x32xf32>, vector<16x32xf32> -> vector<16x32xf32>
    %c8 = arith.constant 8 : index
    %c0_99 = arith.constant 0 : index
    %173 = vector.load %arg9[%c8, %c0_99] : memref<14x32xf32, #tpu.memory_space<vmem>>, vector<1x32xf32>
    %174 = vector.broadcast %173 : vector<1x32xf32> to vector<16x32xf32>
    %175 = arith.addf %172, %174 : vector<16x32xf32>
    %c6_100 = arith.constant 6 : index
    %c0_101 = arith.constant 0 : index
    %c0_102 = arith.constant 0 : index
    %176 = vector.load %arg7[%c6_100, %c0_101, %c0_102] : memref<11x32x32xf32, #tpu.memory_space<vmem>>, vector<1x32x32xf32>
    %177 = vector.shape_cast %176 : vector<1x32x32xf32> to vector<32x32xf32>
    %cst_103 = arith.constant dense<0.000000e+00> : vector<16x32xf32>
    %178 = tpu.matmul %175, %177, %cst_103 {dimension_numbers = #tpu.dot_dimension_numbers<[1], [0], [0], [1], [0, 0, 1, 1], [], []>} : vector<16x32xf32>, vector<32x32xf32>, vector<16x32xf32> -> vector<16x32xf32>
    %179 = arith.addf %128, %178 : vector<16x32xf32>
    %180 = tpu.concatenate %175, %175 in 0 : vector<16x32xf32>, vector<16x32xf32> -> vector<32x32xf32>
    %c7_104 = arith.constant 7 : index
    %181 = memref.load %arg0[%c7_104] : memref<8xf32, #tpu.memory_space<smem>>
    %c6_105 = arith.constant 6 : index
    %182 = memref.load %arg0[%c6_105] : memref<8xf32, #tpu.memory_space<smem>>
    %c7_106 = arith.constant 7 : index
    %183 = memref.load %arg0[%c7_106] : memref<8xf32, #tpu.memory_space<smem>>
    %184 = arith.subf %182, %183 : f32
    %185 = vector.broadcast %184 : f32 to vector<32x1xf32>
    %186 = arith.mulf %185, %23 : vector<32x1xf32>
    %187 = vector.broadcast %181 : f32 to vector<32x1xf32>
    %188 = arith.addf %187, %186 : vector<32x1xf32>
    %189 = vector.broadcast %188 : vector<32x1xf32> to vector<32x32xf32>
    %190 = arith.mulf %189, %180 : vector<32x32xf32>
    %cst_107 = arith.constant dense<0.000000e+00> : vector<32x32xf32>
    %191 = tpu.matmul %0, %180, %cst_107 {dimension_numbers = #tpu.dot_dimension_numbers<[1], [0], [0], [1], [0, 0, 1, 1], [], []>} : vector<32x32xf32>, vector<32x32xf32>, vector<32x32xf32> -> vector<32x32xf32>
    %192 = arith.addf %190, %191 : vector<32x32xf32>
    %c3_108 = arith.constant 3 : index
    %c0_109 = arith.constant 0 : index
    %c0_110 = arith.constant 0 : index
    %193 = vector.load %arg4[%c3_108, %c0_109, %c0_110] : memref<4x32x64xf32, #tpu.memory_space<vmem>>, vector<1x32x64xf32>
    %194 = vector.shape_cast %193 : vector<1x32x64xf32> to vector<32x64xf32>
    %cst_111 = arith.constant dense<0.000000e+00> : vector<32x64xf32>
    %195 = tpu.matmul %192, %194, %cst_111 {dimension_numbers = #tpu.dot_dimension_numbers<[1], [0], [0], [1], [0, 0, 1, 1], [], []>} : vector<32x32xf32>, vector<32x64xf32>, vector<32x64xf32> -> vector<32x64xf32>
    %c5_112 = arith.constant 5 : index
    %c0_113 = arith.constant 0 : index
    %196 = vector.load %arg8[%c5_112, %c0_113] : memref<7x64xf32, #tpu.memory_space<vmem>>, vector<1x64xf32>
    %197 = vector.broadcast %196 : vector<1x64xf32> to vector<32x64xf32>
    %198 = arith.addf %195, %197 : vector<32x64xf32>
    %cst_114 = arith.constant 0.000000e+00 : f32
    %199 = vector.broadcast %cst_114 : f32 to vector<32x64xf32>
    %200 = arith.maximumf %198, %199 : vector<32x64xf32>
    %c2_115 = arith.constant 2 : index
    %c0_116 = arith.constant 0 : index
    %c0_117 = arith.constant 0 : index
    %201 = vector.load %arg5[%c2_115, %c0_116, %c0_117] : memref<3x64x64xf32, #tpu.memory_space<vmem>>, vector<1x64x64xf32>
    %202 = vector.shape_cast %201 : vector<1x64x64xf32> to vector<64x64xf32>
    %cst_118 = arith.constant dense<0.000000e+00> : vector<32x64xf32>
    %203 = tpu.matmul %200, %202, %cst_118 {dimension_numbers = #tpu.dot_dimension_numbers<[1], [0], [0], [1], [0, 0, 1, 1], [], []>} : vector<32x64xf32>, vector<64x64xf32>, vector<32x64xf32> -> vector<32x64xf32>
    %c6_119 = arith.constant 6 : index
    %c0_120 = arith.constant 0 : index
    %204 = vector.load %arg8[%c6_119, %c0_120] : memref<7x64xf32, #tpu.memory_space<vmem>>, vector<1x64xf32>
    %205 = vector.broadcast %204 : vector<1x64xf32> to vector<32x64xf32>
    %206 = arith.addf %203, %205 : vector<32x64xf32>
    %cst_121 = arith.constant 0.000000e+00 : f32
    %207 = vector.broadcast %cst_121 : f32 to vector<32x64xf32>
    %208 = arith.maximumf %206, %207 : vector<32x64xf32>
    %209 = arith.mulf %208, %18 : vector<32x64xf32>
    %210 = vector.extract_strided_slice %209 {offsets = [0, 0], sizes = [16, 64], strides = [1, 1]} : vector<32x64xf32> to vector<16x64xf32>
    %211 = vector.extract_strided_slice %209 {offsets = [16, 0], sizes = [16, 64], strides = [1, 1]} : vector<32x64xf32> to vector<16x64xf32>
    %212 = arith.addf %210, %211 : vector<16x64xf32>
    %c3_122 = arith.constant 3 : index
    %c0_123 = arith.constant 0 : index
    %c0_124 = arith.constant 0 : index
    %213 = vector.load %arg6[%c3_122, %c0_123, %c0_124] : memref<4x64x32xf32, #tpu.memory_space<vmem>>, vector<1x64x32xf32>
    %214 = vector.shape_cast %213 : vector<1x64x32xf32> to vector<64x32xf32>
    %cst_125 = arith.constant dense<0.000000e+00> : vector<16x32xf32>
    %215 = tpu.matmul %212, %214, %cst_125 {dimension_numbers = #tpu.dot_dimension_numbers<[1], [0], [0], [1], [0, 0, 1, 1], [], []>} : vector<16x64xf32>, vector<64x32xf32>, vector<16x32xf32> -> vector<16x32xf32>
    %c5_126 = arith.constant 5 : index
    %c0_127 = arith.constant 0 : index
    %216 = vector.load %arg9[%c5_126, %c0_127] : memref<14x32xf32, #tpu.memory_space<vmem>>, vector<1x32xf32>
    %217 = vector.broadcast %216 : vector<1x32xf32> to vector<16x32xf32>
    %218 = arith.addf %215, %217 : vector<16x32xf32>
    %cst_128 = arith.constant 0.000000e+00 : f32
    %219 = vector.broadcast %cst_128 : f32 to vector<16x32xf32>
    %220 = arith.maximumf %218, %219 : vector<16x32xf32>
    %c3_129 = arith.constant 3 : index
    %c0_130 = arith.constant 0 : index
    %c0_131 = arith.constant 0 : index
    %221 = vector.load %arg7[%c3_129, %c0_130, %c0_131] : memref<11x32x32xf32, #tpu.memory_space<vmem>>, vector<1x32x32xf32>
    %222 = vector.shape_cast %221 : vector<1x32x32xf32> to vector<32x32xf32>
    %cst_132 = arith.constant dense<0.000000e+00> : vector<16x32xf32>
    %223 = tpu.matmul %220, %222, %cst_132 {dimension_numbers = #tpu.dot_dimension_numbers<[1], [0], [0], [1], [0, 0, 1, 1], [], []>} : vector<16x32xf32>, vector<32x32xf32>, vector<16x32xf32> -> vector<16x32xf32>
    %c9 = arith.constant 9 : index
    %c0_133 = arith.constant 0 : index
    %224 = vector.load %arg9[%c9, %c0_133] : memref<14x32xf32, #tpu.memory_space<vmem>>, vector<1x32xf32>
    %225 = vector.broadcast %224 : vector<1x32xf32> to vector<16x32xf32>
    %226 = arith.addf %223, %225 : vector<16x32xf32>
    %c7_134 = arith.constant 7 : index
    %c0_135 = arith.constant 0 : index
    %c0_136 = arith.constant 0 : index
    %227 = vector.load %arg7[%c7_134, %c0_135, %c0_136] : memref<11x32x32xf32, #tpu.memory_space<vmem>>, vector<1x32x32xf32>
    %228 = vector.shape_cast %227 : vector<1x32x32xf32> to vector<32x32xf32>
    %cst_137 = arith.constant dense<0.000000e+00> : vector<16x32xf32>
    %229 = tpu.matmul %226, %228, %cst_137 {dimension_numbers = #tpu.dot_dimension_numbers<[1], [0], [0], [1], [0, 0, 1, 1], [], []>} : vector<16x32xf32>, vector<32x32xf32>, vector<16x32xf32> -> vector<16x32xf32>
    %230 = arith.addf %179, %229 : vector<16x32xf32>
    %cst_138 = arith.constant dense<0.000000e+00> : vector<2x32xf32>
    %231 = tpu.matmul %1, %230, %cst_138 {dimension_numbers = #tpu.dot_dimension_numbers<[1], [0], [0], [1], [0, 0, 1, 1], [], []>} : vector<2x16xf32>, vector<16x32xf32>, vector<2x32xf32> -> vector<2x32xf32>
    %c10 = arith.constant 10 : index
    %c0_139 = arith.constant 0 : index
    %232 = vector.load %arg9[%c10, %c0_139] : memref<14x32xf32, #tpu.memory_space<vmem>>, vector<1x32xf32>
    %233 = vector.broadcast %232 : vector<1x32xf32> to vector<2x32xf32>
    %234 = arith.addf %231, %233 : vector<2x32xf32>
    %cst_140 = arith.constant 0.000000e+00 : f32
    %235 = vector.broadcast %cst_140 : f32 to vector<2x32xf32>
    %236 = arith.maximumf %234, %235 : vector<2x32xf32>
    %c8_141 = arith.constant 8 : index
    %c0_142 = arith.constant 0 : index
    %c0_143 = arith.constant 0 : index
    %237 = vector.load %arg7[%c8_141, %c0_142, %c0_143] : memref<11x32x32xf32, #tpu.memory_space<vmem>>, vector<1x32x32xf32>
    %238 = vector.shape_cast %237 : vector<1x32x32xf32> to vector<32x32xf32>
    %cst_144 = arith.constant dense<0.000000e+00> : vector<2x32xf32>
    %239 = tpu.matmul %236, %238, %cst_144 {dimension_numbers = #tpu.dot_dimension_numbers<[1], [0], [0], [1], [0, 0, 1, 1], [], []>} : vector<2x32xf32>, vector<32x32xf32>, vector<2x32xf32> -> vector<2x32xf32>
    %c11 = arith.constant 11 : index
    %c0_145 = arith.constant 0 : index
    %240 = vector.load %arg9[%c11, %c0_145] : memref<14x32xf32, #tpu.memory_space<vmem>>, vector<1x32xf32>
    %241 = vector.broadcast %240 : vector<1x32xf32> to vector<2x32xf32>
    %242 = arith.addf %239, %241 : vector<2x32xf32>
    %cst_146 = arith.constant 0.000000e+00 : f32
    %243 = vector.broadcast %cst_146 : f32 to vector<2x32xf32>
    %244 = arith.maximumf %242, %243 : vector<2x32xf32>
    %c9_147 = arith.constant 9 : index
    %c0_148 = arith.constant 0 : index
    %c0_149 = arith.constant 0 : index
    %245 = vector.load %arg7[%c9_147, %c0_148, %c0_149] : memref<11x32x32xf32, #tpu.memory_space<vmem>>, vector<1x32x32xf32>
    %246 = vector.shape_cast %245 : vector<1x32x32xf32> to vector<32x32xf32>
    %cst_150 = arith.constant dense<0.000000e+00> : vector<2x32xf32>
    %247 = tpu.matmul %244, %246, %cst_150 {dimension_numbers = #tpu.dot_dimension_numbers<[1], [0], [0], [1], [0, 0, 1, 1], [], []>} : vector<2x32xf32>, vector<32x32xf32>, vector<2x32xf32> -> vector<2x32xf32>
    %c12 = arith.constant 12 : index
    %c0_151 = arith.constant 0 : index
    %248 = vector.load %arg9[%c12, %c0_151] : memref<14x32xf32, #tpu.memory_space<vmem>>, vector<1x32xf32>
    %249 = vector.broadcast %248 : vector<1x32xf32> to vector<2x32xf32>
    %250 = arith.addf %247, %249 : vector<2x32xf32>
    %cst_152 = arith.constant 0.000000e+00 : f32
    %251 = vector.broadcast %cst_152 : f32 to vector<2x32xf32>
    %252 = arith.maximumf %250, %251 : vector<2x32xf32>
    %c10_153 = arith.constant 10 : index
    %c0_154 = arith.constant 0 : index
    %c0_155 = arith.constant 0 : index
    %253 = vector.load %arg7[%c10_153, %c0_154, %c0_155] : memref<11x32x32xf32, #tpu.memory_space<vmem>>, vector<1x32x32xf32>
    %254 = vector.shape_cast %253 : vector<1x32x32xf32> to vector<32x32xf32>
    %cst_156 = arith.constant dense<0.000000e+00> : vector<2x32xf32>
    %255 = tpu.matmul %252, %254, %cst_156 {dimension_numbers = #tpu.dot_dimension_numbers<[1], [0], [0], [1], [0, 0, 1, 1], [], []>} : vector<2x32xf32>, vector<32x32xf32>, vector<2x32xf32> -> vector<2x32xf32>
    %c13 = arith.constant 13 : index
    %c0_157 = arith.constant 0 : index
    %256 = vector.load %arg9[%c13, %c0_157] : memref<14x32xf32, #tpu.memory_space<vmem>>, vector<1x32xf32>
    %257 = vector.broadcast %256 : vector<1x32xf32> to vector<2x32xf32>
    %258 = arith.addf %255, %257 : vector<2x32xf32>
    %c0_158 = arith.constant 0 : index
    %c0_159 = arith.constant 0 : index
    %259 = vector.load %arg10[%c0_158, %c0_159] : memref<2x32xf32, #tpu.memory_space<vmem>>, vector<2x32xf32>
    tpu.vector_store %arg10[%c0_158, %c0_159], %258 {strides = array<i32>} : memref<2x32xf32, #tpu.memory_space<vmem>>, vector<2x32xf32>,
    return
  }
}

</mosaic_0001>

<bundles_post_ra>
// kernel: net_gin_forward.1
= control target key start
LH: loop header
LB: loop body
LE: loop exit
PB: predicated region body
PF: predicated region fallthrough
CT: control target
= control target key end

     0   :  { %15 = vsyncpa [#allocation3], 0  ;;  %s4511_s0 = inlined_call_operand.vmem [shape: f32[8], index: 0, kind: input, shape index: {}]   ;;  %s4512_s1 = inlined_call_operand.vmem [shape: f32[32,32], index: 1, kind: input, shape index: {}]   ;;  %s4513_s2 = inlined_call_operand.vmem [shape: f32[32,32], index: 2, kind: input, shape index: {}]   ;;  %s4514_s3 = inlined_call_operand.vmem [shape: f32[2,16], index: 3, kind: input, shape index: {}]   ;;  %s4515_s4 = inlined_call_operand.vmem [shape: f32[4,32,64], index: 4, kind: input, shape index: {}]   ;;  %s4516_s5 = inlined_call_operand.vmem [shape: f32[3,64,64], index: 5, kind: input, shape index: {}]   ;;  %s4517_s6 = inlined_call_operand.vmem [shape: f32[4,64,32], index: 6, kind: input, shape index: {}]   ;;  %s4518_s7 = inlined_call_operand.vmem [shape: f32[11,32,32], index: 7, kind: input, shape index: {}]   ;;  %s4519_s8 = inlined_call_operand.vmem [shape: f32[7,64], index: 8, kind: input, shape index: {}]   ;;  %s4520_s9 = inlined_call_operand.vmem [shape: f32[14,32], index: 9, kind: input, shape index: {}]   ;;  %s4521_s10 = inlined_call_operand.vmem [shape: f32[2,32], index: 10, kind: output, shape index: {}]  }
   0x1   :  { %s22_s15 = sshll.u32 %s4511_s0, 4  ;;  %s23_s15 = int_to_ptr.vmem [resolvable:$true] %s22_s15 }
   0x2   :  { %s3858_s16 = scalar_lea.vmem %s23_s15, 16  ;;  %p3863_p1 = scmp.lt.s32.totalorder %s23_s15, %s23_s15 }
   0x3   :  { %p3859_p0 = scmp.ne.s32.totalorder %s23_s15, %s3858_s16  ;;  %p3864_p2 = scmp.lt.s32.totalorder %s3858_s16, %s3858_s16 }
   0x5   :  { %p3865_p3 = por %p3864_p2, %p3863_p1 }
   0x7   :  { %p3866_p4 = pnand %p3865_p3, %p3859_p0 }
   0x9   :  { %3869 = shalt.err (!%p3866_p4)
}
   0xa   :  { %s3872_s17 = smov [#allocation2]  }
   0xb   :  { %25 = dma.vmem_to_smem %s23_s15, 16, %s3872_s17, [#allocation3]  }
   0xc   :  { %3870 = dma.done.wait [#allocation3], 16  }
   0xd   :  { %3871 = vsyncadd [#allocation3], 4294967280 }
   0xe   :  { %47 = sfence }
   0xf   :  { %v92_v0 = vld [vmem:[%s4513_s2] sm:$0xff]  ;;  %v93_v1 = vld [vmem:[%s4513_s2 + $0x8] sm:$0xff]  ;;  %v94_v2 = vld [vmem:[%s4513_s2 + $0x10] sm:$0xff]  ;;  %vm113_vm0 = vcmask 261120   ;;  %s2809_s22 = sld [smem:[#allocation2 + $0x1]]  ;;  %s97_s23 = sld [smem:[#allocation2]]  ;;  %v58_v19 = vlaneseq }
  0x10   :  { %v3587_v3 = vpack.c.bf16 %v93_v1, %v92_v0  ;;  %v95_v4 = vld [vmem:[%s4513_s2 + $0x18] sm:$0xff]  ;;  %v3949_v5 = vld [vmem:[%s4512_s1] sm:$0xff]  ;;  %v3956_v7 = vld [vmem:[%s4512_s1 + $0x8] sm:$0xff]  ;;  %vm371_vm2 = vcmask 523264   ;;  %s2829_s29 = sld [smem:[#allocation2 + $0x3]]  ;;  %s2830_s2 = sld [smem:[#allocation2 + $0x2]] }
  0x11   :  { %v3591_v6 = vpack.c.bf16 %v95_v4, %v94_v2  ;;  %3213 = vmatprep.mubr.msk.f32.mxu0 %vm113_vm0, %v3949_v5  ;;  %v3961_v8 = vld [vmem:[%s4512_s1 + $0x10] sm:$0xff]  ;;  %v3970_v9 = vld [vmem:[%s4512_s1 + $0x18] sm:$0xff]  ;;  %v242_v10 = vld [vmem:[%s4515_s4] sm:$0xff]  ;;  %v219_v20 = vshrl.u32 %v58_v19, 7  ;;  %s2875_s14 = sld [smem:[#allocation2 + $0x5]]  ;;  %s2876_s15 = sld [smem:[#allocation2 + $0x4]] }
  0x12   :  { %3588 = vmatprep.subr.bf16.mxu0 %v3587_v3  ;;  %v243_v11 = vld [vmem:[%s4515_s4 + $0x8] sm:$0xff]  ;;  %v244_v13 = vld [vmem:[%s4515_s4 + $0x10] sm:$0xff]  ;;  %v245_v14 = vld [vmem:[%s4515_s4 + $0x18] sm:$0xff]  ;;  %s2927_s11 = sld [smem:[#allocation2 + $0x7]]  ;;  %s2928_s12 = sld [smem:[#allocation2 + $0x6]]  ;;  %vm3875_vm3 = vmmov 0  }
  0x13   :  { %3590 = vmatpush3.bf16.msra.mxu0 %v3587_v3  ;;  %v3595_v12 = vpack.c.bf16 %v243_v11, %v242_v10  ;;  %v3599_v15 = vpack.c.bf16 %v245_v14, %v244_v13  ;;  %v358_v16 = vld [vmem:[%s4517_s6] sm:$0xff]  ;;  %v359_v17 = vld [vmem:[%s4517_s6 + $0x8] sm:$0xff]  ;;  %v220_v26 = vsub.s32 0, %v219_v20  ;;  %v360_v55 = vld [vmem:[%s4517_s6 + $0x10] sm:$0xff]  ;;  %v59_v3 = vand.u32 127, %v58_v19 }
  0x14   :  { %3592 = vmatprep.subr.bf16.mxu0 %v3591_v6  ;;  %v3603_v18 = vpack.c.bf16 %v359_v17, %v358_v16  ;;  %v215_v21 = vld [vmem:[%s4520_s9 + $0x1] sm:$0x1]  ;;  %v216_v22 = vld [vmem:[%s4520_s9] sm:$0x1]  ;;  %v361_v56 = vld [vmem:[%s4517_s6 + $0x18] sm:$0xff]  ;;  %vm2475_vm4 = vcmask 130048  }
  0x15   :  { %3596 = vmatprep.subr.bf16.mxu1 %v3595_v12  ;;  %s98_s24 = ssub.f32 %s97_s23, %s2809_s22  ;;  %v104_v24 = vstv %s2809_s22  ;;  %v217_v25 = vsub.f32 %v216_v22, %v215_v21  ;;  %v229_v30 = vrot.slane %v215_v21, %v220_v26  ;;  %v3607_v57 = vpack.c.bf16 %v361_v56, %v360_v55  ;;  %v362_v58 = vld [vmem:[%s4517_s6 + $0x20] sm:$0xff]  ;;  %v363_v59 = vld [vmem:[%s4517_s6 + $0x28] sm:$0xff]  ;;  %v364_v61 = vld [vmem:[%s4517_s6 + $0x30] sm:$0xff] }
  0x16   :  { %3598 = vmatpush3.bf16.msra.mxu1 %v3595_v12  ;;  %v3611_v60 = vpack.c.bf16 %v363_v59, %v362_v58  ;;  %v365_v62 = vld [vmem:[%s4517_s6 + $0x38] sm:$0xff]  ;;  %vm72_vm1 = vcmp.lt.s32.totalorder %v59_v3, 32  ;;  %v2814_v11 = vld [vmem:[%s4519_s8] ss:$0 sm:$0xff]  ;;  %v769_v58 = vld [vmem:[%s4516_s5 + $0x10] sm:$0xff]  ;;  %s552_s30 = ssub.f32 %s2830_s2, %s2829_s29  ;;  %vm2801_vm5 = vcmask 254976  }
  0x17   :  { %3594 = vmatpush3.bf16.msra.mxu0 %v3591_v6  ;;  %3600 = vmatprep.subr.bf16.mxu1 %v3599_v15  ;;  %v99_v23 = vstv %s98_s24  ;;  %v221_v29 = vrot.slane %v217_v25, %v220_v26  ;;  %v3615_v63 = vpack.c.bf16 %v365_v62, %v364_v61  ;;  %v767_v56 = vld [vmem:[%s4516_s5] sm:$0xff]  ;;  %s1244_s16 = ssub.f32 %s2876_s15, %s2875_s14 }
  0x18   :  { %3604 = vmatprep.subr.bf16.mxu0 %v3603_v18  ;;  %v105_v27 = vadd.f32 %v104_v24, %v99_v23  ;;  %v102_v28 = vmul.f32 0.0, %v99_v23  ;;  %v771_v62 = vld [vmem:[%s4516_s5 + $0x20] sm:$0xff]  ;;  %s1858_s13 = ssub.f32 %s2928_s12, %s2927_s11 }
  0x19   :  { %v230_v34 = vadd.f32 %v229_v30, %v221_v29  ;;  %v224_v35 = vmul.f32 0.0, %v221_v29 }
  0x1a   :  { %3214 = vmatmul.mubr.msk.f32.vlgmr.msra.gmra.mrb[0].mxu0 %vm113_vm0, %v3956_v7  ;;  %3602 = vmatpush3.bf16.msra.mxu1 %v3599_v15  ;;  %v110_v31 = vmul.f32 %v105_v27, %v93_v1  ;;  %v107_v32 = vadd.f32 %v104_v24, %v102_v28  ;;  %v109_v33 = vmul.f32 %v105_v27, %v92_v0  ;;  %v455_v0 = vld [vmem:[%s4518_s7] sm:$0xff]  ;;  %v456_v1 = vld [vmem:[%s4518_s7 + $0x8] sm:$0xff] }
  0x1b   :  { %3216 = vmatprep.mubr.msk.f32.mxu0 %vm113_vm0, %v3961_v8  ;;  %3606 = vmatpush3.bf16.msra.mxu0 %v3603_v18  ;;  %v232_v43 = vadd.f32 %v229_v30, %v224_v35  ;;  %v458_v35 = vld [vmem:[%s4518_s7 + $0x18] sm:$0xff] }
  0x1c   :  { %v112_v39 = vmul.f32 %v107_v32, %v95_v4  ;;  %v111_v41 = vmul.f32 %v107_v32, %v94_v2  ;;  %3608 = vmatprep.subr.bf16.mxu0 %v3607_v57  ;;  %v3619_v2 = vpack.c.bf16 %v456_v1, %v455_v0  ;;  %v3873_v4 = vmov 0.0  }
  0x1d   :  { %v2808_v6 = vsel %vm72_vm1, 1.0, %v3873_v4  ;;  %v553_v1 = vstv %s552_s30 }
  0x1e   :  { %3217 = vmatmul.mubr.msk.f32.gmra.mrb[2].mxu0 %vm113_vm0, %v3970_v9  ;;  %3620 = vmatprep.subr.bf16.mxu1 %v3619_v2  ;;  %v83_v10 = vsub.f32 1.0, %v2808_v6  ;;  %v77_v13 = vmul.f32 0.0, %v2808_v6 }
  0x1f   :  { %3610 = vmatpush3.bf16.msra.mxu0 %v3607_v57  ;;  %v768_v57 = vld [vmem:[%s4516_s5 + $0x8] sm:$0xff] }
  0x20   :  { %3612 = vmatprep.subr.bf16.mxu0 %v3611_v60  ;;  %v84_v14 = vmul.f32 0.0, %v83_v10  ;;  %v4032_v21 = vadd.f32 %v83_v10, %v77_v13  ;;  %v3643_v59 = vpack.c.bf16 %v768_v57, %v767_v56  ;;  %v2861_v56 = vld [vmem:[%s4518_s7 + $0x28] sm:$0xff] }
  0x22   :  { %v4030_v20 = vadd.f32 %v2808_v6, %v84_v14  ;;  %v556_v6 = vmul.f32 0.0, %v553_v1 }
  0x23   :  { %3614 = vmatpush3.bf16.msra.mxu0 %v3611_v60  ;;  %v770_v60 = vld [vmem:[%s4516_s5 + $0x18] sm:$0xff] }
  0x24   :  { %3616 = vmatprep.subr.bf16.mxu0 %v3615_v63  ;;  %v3647_v61 = vpack.c.bf16 %v770_v60, %v769_v58  ;;  %v2844_v58 = vld [vmem:[%s4519_s8 + $0x2] ss:$0 sm:$0xff] }
  0x27   :  { %3618 = vmatpush3.bf16.msra.mxu0 %v3615_v63  ;;  %v772_v63 = vld [vmem:[%s4516_s5 + $0x28] sm:$0xff] }
  0x28   :  { %v3651_v0 = vpack.c.bf16 %v772_v63, %v771_v62 }
  0xed   :  { %v3215_v36 = vpop.f32.mrb[0].mxu0 }
  0xee   :  { %v212_v37 = vadd.f32 %v3215_v36, %v110_v31  ;;  %v192_v38 = vpop.f32.mrb[1].mxu0 }
  0xef   :  { %v211_v40 = vadd.f32 %v192_v38, %v109_v33 }
  0xf0   :  { %v235_v42 = vadd.f32 %v230_v34, %v212_v37  ;;  %v2819_v37 = vld [vmem:[%s4520_s9 + $0x2] ss:$0 sm:$0xff] }
  0xf1   :  { %v3218_v44 = vpop.f32.mrb[2].mxu0  ;;  %v234_v45 = vadd.f32 %v230_v34, %v211_v40  ;;  %v457_v34 = vld [vmem:[%s4518_s7 + $0x10] sm:$0xff] }
  0xf2   :  { %v214_v46 = vadd.f32 %v3218_v44, %v112_v39  ;;  %v202_v47 = vpop.f32.mrb[3].mxu0  ;;  %v239_v50 = vmax.f32 %v235_v42, 0.0  ;;  %v3623_v36 = vpack.c.bf16 %v458_v35, %v457_v34  ;;  %v2835_v44 = vld [vmem:[%s4515_s4 + $0x20] sm:$0xff] }
  0xf3   :  { %v213_v48 = vadd.f32 %v202_v47, %v111_v41  ;;  %v238_v49 = vmax.f32 %v234_v45, 0.0  ;;  %v2836_v45 = vld [vmem:[%s4515_s4 + $0x28] sm:$0xff]  ;;  %v2822_v47 = vld [vmem:[%s4520_s9 + $0x6] ss:$0 sm:$0xff] }
  0xf4   :  { %v237_v51 = vadd.f32 %v232_v43, %v214_v46  ;;  %v3635_v46 = vpack.c.bf16 %v2836_v45, %v2835_v44  ;;  %v2851_v44 = vld [vmem:[%s4517_s6 + $0x50] sm:$0xff]  ;;  %v2852_v45 = vld [vmem:[%s4517_s6 + $0x58] sm:$0xff] }
  0xf5   :  { %v236_v52 = vadd.f32 %v232_v43, %v213_v48  ;;  %3227 = vmatprep.mubr.msk.f32.mxu1 %vm113_vm0, %v238_v49 }
  0xf6   :  { %3228 = vmatmul.mubr.msk.f32.vlgmr.msra.gmra.mrb[0].mxu1 %vm113_vm0, %v239_v50  ;;  %v241_v54 = vmax.f32 %v237_v51, 0.0  ;;  %3636 = vmatprep.subr.bf16.mxu0 %v3635_v46 }
  0xf7   :  { %v240_v53 = vmax.f32 %v236_v52, 0.0  ;;  %3622 = vmatpush3.bf16.msra.mxu1 %v3619_v2  ;;  %v558_v2 = vstv %s2829_s29 }
  0xf8   :  { %3624 = vmatprep.subr.bf16.mxu1 %v3623_v36  ;;  %v559_v3 = vadd.f32 %v558_v2, %v553_v1 }
  0xf9   :  { %3230 = vmatprep.mubr.msk.f32.mxu1 %vm113_vm0, %v240_v53  ;;  %v2837_v53 = vld [vmem:[%s4515_s4 + $0x30] sm:$0xff] }
  0xfa   :  { %3231 = vmatmul.mubr.msk.f32.gmra.mrb[2].mxu1 %vm113_vm0, %v241_v54  ;;  %v2838_v54 = vld [vmem:[%s4515_s4 + $0x38] sm:$0xff] }
  0xfb   :  { %3626 = vmatpush3.bf16.msra.mxu1 %v3623_v36  ;;  %v3639_v55 = vpack.c.bf16 %v2838_v54, %v2837_v53  ;;  %v2856_v53 = vld [vmem:[%s4517_s6 + $0x78] sm:$0xff] }
 0x1c9   :  { %v3229_v12 = vpop.f32.mrb[0].mxu1 }
 0x1ca   :  { %v335_v15 = vadd.f32 %v3229_v12, %v2814_v11  ;;  %v329_v16 = vpop.f32.mrb[1].mxu1  ;;  %v561_v12 = vadd.f32 %v558_v2, %v556_v6 }
 0x1cb   :  { %v330_v17 = vadd.f32 %v2814_v11, %v329_v16 }
 0x1cc   :  { %v349_v19 = vmax.f32 %v335_v15, 0.0 }
 0x1cd   :  { %v3232_v18 = vpop.f32.mrb[2].mxu1  ;;  %v348_v24 = vmax.f32 %v330_v17, 0.0 }
 0x1ce   :  { %v345_v22 = vadd.f32 %v3232_v18, %v2814_v11  ;;  %v339_v23 = vpop.f32.mrb[3].mxu1  ;;  %v353_v28 = vmul.f32 %v349_v19, %v4030_v20 }
 0x1cf   :  { %v340_v25 = vadd.f32 %v2814_v11, %v339_v23  ;;  %v352_v30 = vmul.f32 %v348_v24, %v4030_v20 }
 0x1d0   :  { %v351_v26 = vmax.f32 %v345_v22, 0.0 }
 0x1d1   :  { %v350_v27 = vmax.f32 %v340_v25, 0.0  ;;  %v773_v25 = vld [vmem:[%s4516_s5 + $0x30] sm:$0xff] }
 0x1d2   :  { %v355_v29 = vmul.f32 %v351_v26, %v4032_v21  ;;  %v774_v26 = vld [vmem:[%s4516_s5 + $0x38] sm:$0xff] }
 0x1d3   :  { %v354_v31 = vmul.f32 %v350_v27, %v4032_v21  ;;  %v3655_v27 = vpack.c.bf16 %v774_v26, %v773_v25  ;;  %v2857_v26 = vld [vmem:[%s4520_s9 + $0x3] ss:$0 sm:$0xff] }
 0x1d4   :  { %v357_v32 = vadd.f32 %v355_v29, %v353_v28  ;;  %v2849_v28 = vld [vmem:[%s4517_s6 + $0x40] sm:$0xff]  ;;  %v2850_v29 = vld [vmem:[%s4517_s6 + $0x48] sm:$0xff] }
 0x1d5   :  { %v356_v33 = vadd.f32 %v354_v31, %v352_v30  ;;  %v3659_v30 = vpack.c.bf16 %v2850_v29, %v2849_v28  ;;  %v2839_v31 = vld [vmem:[%s4519_s8 + $0x1] ss:$0 sm:$0xff] }
 0x1d7   :  { %3249 = vmatprep.mubr.msk.f32.mxu0 %vm371_vm2, %v356_v33 }
 0x1d8   :  { %3250 = vmatmul.mubr.msk.f32.vlgmr.msra.gmra.mrb[4].mxu0 %vm371_vm2, %v357_v32 }
 0x1d9   :  { %3638 = vmatpush3.bf16.msra.mxu0 %v3635_v46  ;;  %v3663_v46 = vpack.c.bf16 %v2852_v45, %v2851_v44 }
 0x1da   :  { %3640 = vmatprep.subr.bf16.mxu0 %v3639_v55 }
 0x1dd   :  { %3642 = vmatpush3.bf16.msra.mxu0 %v3639_v55  ;;  %v2860_v55 = vld [vmem:[%s4518_s7 + $0x20] sm:$0xff] }
 0x1de   :  { %3660 = vmatprep.subr.bf16.mxu0 %v3659_v30  ;;  %v3675_v57 = vpack.c.bf16 %v2861_v56, %v2860_v55  ;;  %v2891_v55 = vld [vmem:[%s4516_s5 + $0x48] sm:$0xff]  ;;  %v2892_v56 = vld [vmem:[%s4516_s5 + $0x50] sm:$0xff] }
 0x2ab   :  { %v3251_v38 = vpop.f32.mrb[4].mxu0 }
 0x2ac   :  { %v450_v39 = vadd.f32 %v3251_v38, %v2819_v37  ;;  %v444_v40 = vpop.f32.mrb[5].mxu0 }
 0x2ad   :  { %v445_v41 = vadd.f32 %v2819_v37, %v444_v40 }
 0x2ae   :  { %v454_v43 = vmax.f32 %v450_v39, 0.0 }
 0x2af   :  { %v453_v42 = vmax.f32 %v445_v41, 0.0 }
 0x2b1   :  { %3260 = vmatprep.mubr.msk.f32.mxu1 %vm113_vm0, %v453_v42 }
 0x2b2   :  { %3261 = vmatmul.mubr.msk.f32.vlgmr.msra.gmra.mrb[4].mxu1 %vm113_vm0, %v454_v43 }
 0x2b3   :  { %3271 = vmatprep.mubr.msk.f32.mxu1 %vm113_vm0, %v3949_v5 }
 0x385   :  { %v3262_v48 = vpop.f32.mrb[4].mxu1 }
 0x386   :  { %v4062_v49 = vadd.f32 %v3262_v48, %v2822_v47  ;;  %v536_v50 = vpop.f32.mrb[5].mxu1  ;;  %v2854_v48 = vld [vmem:[%s4517_s6 + $0x68] sm:$0xff] }
 0x387   :  { %v4064_v51 = vadd.f32 %v2822_v47, %v536_v50  ;;  %v2853_v47 = vld [vmem:[%s4517_s6 + $0x60] sm:$0xff] }
 0x388   :  { %v564_v13 = vmul.f32 %v559_v3, %v4062_v49  ;;  %v566_v19 = vmul.f32 %v561_v12, %v4062_v49  ;;  %v3667_v50 = vpack.c.bf16 %v2854_v48, %v2853_v47  ;;  %v2881_v48 = vld [vmem:[%s4515_s4 + $0x40] sm:$0xff] }
 0x389   :  { %v3627_v52 = vpack.c.bf16 %v4062_v49, %v4064_v51  ;;  %v563_v11 = vmul.f32 %v559_v3, %v4064_v51  ;;  %v565_v18 = vmul.f32 %v561_v12, %v4064_v51 }
 0x38b   :  { %3628 = vmatprep.subr.bf16.mxu1 %v3627_v52 }
 0x38c   :  { %3630 = vmatpush3.bf16.msra.mxu1 %v3627_v52 }
 0x38d   :  { %3632 = vmatprep.subr.bf16.mxu1 %v3627_v52 }
 0x390   :  { %3634 = vmatpush3.bf16.msra.mxu1 %v3627_v52  ;;  %v2855_v52 = vld [vmem:[%s4517_s6 + $0x70] sm:$0xff] }
 0x391   :  { %3644 = vmatprep.subr.bf16.mxu1 %v3643_v59  ;;  %v3671_v54 = vpack.c.bf16 %v2856_v53, %v2855_v52  ;;  %v2884_v53 = vld [vmem:[%s4515_s4 + $0x58] sm:$0xff] }
 0x393   :  { %3272 = vmatmul.mubr.msk.f32.vlgmr.msra.gmra.mrb[6].mxu1 %vm113_vm0, %v3956_v7 }
 0x394   :  { %3274 = vmatprep.mubr.msk.f32.mxu1 %vm113_vm0, %v3961_v8  ;;  %3646 = vmatpush3.bf16.msra.mxu1 %v3643_v59 }
 0x395   :  { %3648 = vmatprep.subr.bf16.mxu1 %v3647_v61 }
 0x397   :  { %3275 = vmatmul.mubr.msk.f32.gmra.mrb[8].mxu1 %vm113_vm0, %v3970_v9 }
 0x398   :  { %3650 = vmatpush3.bf16.msra.mxu1 %v3647_v61 }
 0x399   :  { %3652 = vmatprep.subr.bf16.mxu1 %v3651_v0 }
 0x39c   :  { %3654 = vmatpush3.bf16.msra.mxu1 %v3651_v0 }
 0x39d   :  { %3656 = vmatprep.subr.bf16.mxu1 %v3655_v27 }
 0x3a0   :  { %3658 = vmatpush3.bf16.msra.mxu1 %v3655_v27 }
 0x3a1   :  { %3676 = vmatprep.subr.bf16.mxu1 %v3675_v57 }
 0x466   :  { %v3273_v10 = vpop.f32.mrb[6].mxu1 }
 0x467   :  { %v633_v14 = vpop.f32.mrb[7].mxu1  ;;  %v653_v16 = vadd.f32 %v3273_v10, %v564_v13 }
 0x468   :  { %v652_v15 = vadd.f32 %v633_v14, %v563_v11 }
 0x46a   :  { %v3276_v17 = vpop.f32.mrb[8].mxu1  ;;  %3285 = vmatprep.mubr.msk.f32.mxu0 %vm113_vm0, %v652_v15 }
 0x46b   :  { %v643_v22 = vpop.f32.mrb[9].mxu1  ;;  %3286 = vmatmul.mubr.msk.f32.vlgmr.msra.gmra.mrb[6].mxu0 %vm113_vm0, %v653_v16  ;;  %v655_v24 = vadd.f32 %v3276_v17, %v566_v19  ;;  %v2863_v19 = vld [vmem:[%s4518_s7 + $0x38] sm:$0xff] }
 0x46c   :  { %v654_v23 = vadd.f32 %v643_v22, %v565_v18  ;;  %3662 = vmatpush3.bf16.msra.mxu0 %v3659_v30  ;;  %v2862_v18 = vld [vmem:[%s4518_s7 + $0x30] sm:$0xff] }
 0x46d   :  { %3664 = vmatprep.subr.bf16.mxu0 %v3663_v46  ;;  %v3679_v22 = vpack.c.bf16 %v2863_v19, %v2862_v18 }
 0x46e   :  { %3288 = vmatprep.mubr.msk.f32.mxu0 %vm113_vm0, %v654_v23  ;;  %v2867_v23 = vld [vmem:[%s4518_s7 + $0xa0] sm:$0xff] }
 0x46f   :  { %3289 = vmatmul.mubr.msk.f32.gmra.mrb[8].mxu0 %vm113_vm0, %v655_v24  ;;  %v2868_v24 = vld [vmem:[%s4518_s7 + $0xa8] sm:$0xff] }
 0x470   :  { %3666 = vmatpush3.bf16.msra.mxu0 %v3663_v46  ;;  %v3683_v25 = vpack.c.bf16 %v2868_v24, %v2867_v23  ;;  %v2896_v23 = vld [vmem:[%s4516_s5 + $0x70] sm:$0xff]  ;;  %v2897_v24 = vld [vmem:[%s4516_s5 + $0x78] sm:$0xff] }
 0x471   :  { %3668 = vmatprep.subr.bf16.mxu0 %v3667_v50 }
 0x474   :  { %3670 = vmatpush3.bf16.msra.mxu0 %v3667_v50  ;;  %v2882_v50 = vld [vmem:[%s4515_s4 + $0x48] sm:$0xff] }
 0x475   :  { %3672 = vmatprep.subr.bf16.mxu0 %v3671_v54  ;;  %v3707_v52 = vpack.c.bf16 %v2882_v50, %v2881_v48  ;;  %v2909_v48 = vld [vmem:[%s4517_s6 + $0xb0] sm:$0xff]  ;;  %v2910_v50 = vld [vmem:[%s4517_s6 + $0xb8] sm:$0xff] }
 0x478   :  { %3674 = vmatpush3.bf16.msra.mxu0 %v3671_v54  ;;  %v2890_v54 = vld [vmem:[%s4516_s5 + $0x40] sm:$0xff] }
 0x479   :  { %3684 = vmatprep.subr.bf16.mxu0 %v3683_v25 }
 0x53e   :  { %v3287_v32 = vpop.f32.mrb[6].mxu0 }
 0x53f   :  { %v750_v33 = vadd.f32 %v3287_v32, %v2839_v31  ;;  %v744_v34 = vpop.f32.mrb[7].mxu0 }
 0x540   :  { %v745_v35 = vadd.f32 %v2839_v31, %v744_v34  ;;  %v2870_v34 = vld [vmem:[%s4518_s7 + $0xb8] sm:$0xff] }
 0x541   :  { %v764_v38 = vmax.f32 %v750_v33, 0.0  ;;  %v2869_v33 = vld [vmem:[%s4518_s7 + $0xb0] sm:$0xff] }
 0x542   :  { %v763_v36 = vmax.f32 %v745_v35, 0.0  ;;  %v3290_v37 = vpop.f32.mrb[8].mxu0  ;;  %v3687_v35 = vpack.c.bf16 %v2870_v34, %v2869_v33 }
 0x543   :  { %v760_v39 = vadd.f32 %v3290_v37, %v2839_v31  ;;  %v754_v40 = vpop.f32.mrb[9].mxu0  ;;  %v2826_v37 = vld [vmem:[%s4518_s7 + $0x88] sm:$0xff] }
 0x544   :  { %v755_v41 = vadd.f32 %v2839_v31, %v754_v40  ;;  %3307 = vmatprep.mubr.msk.f32.mxu1 %vm371_vm2, %v763_v36  ;;  %v2825_v36 = vld [vmem:[%s4518_s7 + $0x80] sm:$0xff] }
 0x545   :  { %3308 = vmatmul.mubr.msk.f32.vlgmr.msra.gmra.mrb[10].mxu1 %vm371_vm2, %v764_v38  ;;  %v766_v43 = vmax.f32 %v760_v39, 0.0  ;;  %v3691_v38 = vpack.c.bf16 %v2826_v37, %v2825_v36  ;;  %v2864_v39 = vld [vmem:[%s4520_s9 + $0x7] ss:$0 sm:$0xff] }
 0x546   :  { %v765_v42 = vmax.f32 %v755_v41, 0.0  ;;  %3678 = vmatpush3.bf16.msra.mxu1 %v3675_v57  ;;  %v2827_v41 = vld [vmem:[%s4518_s7 + $0x90] sm:$0xff]  ;;  %v3715_v57 = vpack.c.bf16 %v2891_v55, %v2890_v54  ;;  %v2898_v54 = vld [vmem:[%s4519_s8 + $0x4] ss:$0 sm:$0xff] }
 0x547   :  { %3680 = vmatprep.subr.bf16.mxu1 %v3679_v22 }
 0x548   :  { %3310 = vmatprep.mubr.msk.f32.mxu1 %vm371_vm2, %v765_v42  ;;  %v2828_v42 = vld [vmem:[%s4518_s7 + $0x98] sm:$0xff] }
 0x549   :  { %3311 = vmatmul.mubr.msk.f32.gmra.mrb[12].mxu1 %vm371_vm2, %v766_v43  ;;  %v3695_v46 = vpack.c.bf16 %v2828_v42, %v2827_v41  ;;  %v2905_v42 = vld [vmem:[%s4517_s6 + $0x90] sm:$0xff] }
 0x54a   :  { %3682 = vmatpush3.bf16.msra.mxu1 %v3679_v22 }
 0x618   :  { %v3309_v59 = vpop.f32.mrb[10].mxu1 }
 0x619   :  { %v864_v60 = vadd.f32 %v3309_v59, %v2844_v58  ;;  %v858_v61 = vpop.f32.mrb[11].mxu1 }
 0x61a   :  { %v859_v62 = vadd.f32 %v2844_v58, %v858_v61  ;;  %v2895_v61 = vld [vmem:[%s4516_s5 + $0x68] sm:$0xff] }
 0x61b   :  { %v878_v0 = vmax.f32 %v864_v60, 0.0  ;;  %v2894_v60 = vld [vmem:[%s4516_s5 + $0x60] sm:$0xff] }
 0x61c   :  { %v3312_v63 = vpop.f32.mrb[12].mxu1  ;;  %v877_v3 = vmax.f32 %v859_v62, 0.0  ;;  %v3723_v62 = vpack.c.bf16 %v2895_v61, %v2894_v60 }
 0x61d   :  { %v874_v1 = vadd.f32 %v3312_v63, %v2844_v58  ;;  %v868_v2 = vpop.f32.mrb[13].mxu1  ;;  %v882_v12 = vmul.f32 %v878_v0, %v4030_v20  ;;  %v1245_v63 = vstv %s1244_s16  ;;  %v1250_v0 = vstv %s2875_s14 }
 0x61e   :  { %v869_v6 = vadd.f32 %v2844_v58, %v868_v2  ;;  %v881_v14 = vmul.f32 %v877_v3, %v4030_v20  ;;  %v2893_v58 = vld [vmem:[%s4516_s5 + $0x58] sm:$0xff]  ;;  %v1248_v2 = vmul.f32 0.0, %v1245_v63 }
 0x61f   :  { %v880_v10 = vmax.f32 %v874_v1, 0.0  ;;  %v3719_v59 = vpack.c.bf16 %v2893_v58, %v2892_v56  ;;  %v1251_v1 = vadd.f32 %v1250_v0, %v1245_v63 }
 0x620   :  { %v879_v11 = vmax.f32 %v869_v6, 0.0  ;;  %v1253_v6 = vadd.f32 %v1250_v0, %v1248_v2 }
 0x621   :  { %v884_v13 = vmul.f32 %v880_v10, %v4032_v21 }
 0x622   :  { %v883_v15 = vmul.f32 %v879_v11, %v4032_v21 }
 0x623   :  { %v886_v16 = vadd.f32 %v884_v13, %v882_v12 }
 0x624   :  { %v885_v17 = vadd.f32 %v883_v15, %v881_v14 }
 0x626   :  { %3329 = vmatprep.mubr.msk.f32.mxu0 %vm371_vm2, %v885_v17 }
 0x627   :  { %3330 = vmatmul.mubr.msk.f32.vlgmr.msra.gmra.mrb[10].mxu0 %vm371_vm2, %v886_v16 }
 0x628   :  { %3686 = vmatpush3.bf16.msra.mxu0 %v3683_v25  ;;  %v3727_v25 = vpack.c.bf16 %v2897_v24, %v2896_v23 }
 0x629   :  { %3688 = vmatprep.subr.bf16.mxu0 %v3687_v35 }
 0x62c   :  { %3690 = vmatpush3.bf16.msra.mxu0 %v3687_v35 }
 0x62d   :  { %3692 = vmatprep.subr.bf16.mxu0 %v3691_v38 }
 0x6fa   :  { %v3331_v27 = vpop.f32.mrb[10].mxu0 }
 0x6fb   :  { %v979_v28 = vadd.f32 %v3331_v27, %v2857_v26  ;;  %v973_v29 = vpop.f32.mrb[11].mxu0  ;;  %v2904_v27 = vld [vmem:[%s4517_s6 + $0x88] sm:$0xff] }
 0x6fc   :  { %v974_v30 = vadd.f32 %v2857_v26, %v973_v29  ;;  %v2903_v26 = vld [vmem:[%s4517_s6 + $0x80] sm:$0xff] }
 0x6fd   :  { %v983_v32 = vmax.f32 %v979_v28, 0.0  ;;  %v3731_v28 = vpack.c.bf16 %v2904_v27, %v2903_v26  ;;  %v2885_v29 = vld [vmem:[%s4519_s8 + $0x3] ss:$0 sm:$0xff] }
 0x6fe   :  { %v982_v31 = vmax.f32 %v974_v30, 0.0 }
 0x700   :  { %3340 = vmatprep.mubr.msk.f32.mxu1 %vm113_vm0, %v982_v31 }
 0x701   :  { %3341 = vmatmul.mubr.msk.f32.vlgmr.msra.gmra.mrb[14].mxu1 %vm113_vm0, %v983_v32 }
 0x702   :  { %3373 = vmatprep.mubr.msk.f32.mxu1 %vm113_vm0, %v3949_v5 }
 0x7d4   :  { %v3342_v40 = vpop.f32.mrb[14].mxu1 }
 0x7d5   :  { %v1072_v43 = vadd.f32 %v3342_v40, %v2864_v39  ;;  %v1066_v44 = vpop.f32.mrb[15].mxu1 }
 0x7d6   :  { %v1067_v45 = vadd.f32 %v2864_v39, %v1066_v44 }
 0x7d7   :  { %v1256_v3 = vmul.f32 %v1251_v1, %v1072_v43  ;;  %v1258_v15 = vmul.f32 %v1253_v6, %v1072_v43 }
 0x7d8   :  { %3351 = vmatprep.mubr.msk.f32.mxu0 %vm113_vm0, %v1067_v45  ;;  %v3699_v47 = vpack.c.bf16 %v1072_v43, %v1067_v45  ;;  %v1255_v11 = vmul.f32 %v1251_v1, %v1067_v45  ;;  %v1257_v17 = vmul.f32 %v1253_v6, %v1067_v45  ;;  %v2907_v45 = vld [vmem:[%s4517_s6 + $0xa0] sm:$0xff] }
 0x7d9   :  { %3352 = vmatmul.mubr.msk.f32.vlgmr.msra.gmra.mrb[12].mxu0 %vm113_vm0, %v1072_v43  ;;  %v2906_v43 = vld [vmem:[%s4517_s6 + $0x98] sm:$0xff] }
 0x7da   :  { %3694 = vmatpush3.bf16.msra.mxu0 %v3691_v38  ;;  %3362 = vmatprep.mubr.msk.f32.mxu0 %vm113_vm0, %v4064_v51  ;;  %v2883_v51 = vld [vmem:[%s4515_s4 + $0x50] sm:$0xff]  ;;  %v3735_v44 = vpack.c.bf16 %v2906_v43, %v2905_v42 }
 0x7db   :  { %3700 = vmatprep.subr.bf16.mxu1 %v3699_v47  ;;  %3696 = vmatprep.subr.bf16.mxu0 %v3695_v46 }
 0x7dc   :  { %3702 = vmatpush3.bf16.msra.mxu1 %v3699_v47 }
 0x7dd   :  { %3704 = vmatprep.subr.bf16.mxu1 %v3699_v47 }
 0x7de   :  { %3698 = vmatpush3.bf16.msra.mxu0 %v3695_v46  ;;  %v2908_v46 = vld [vmem:[%s4517_s6 + $0xa8] sm:$0xff] }
 0x7df   :  { %3716 = vmatprep.subr.bf16.mxu0 %v3715_v57 }
 0x7e0   :  { %3706 = vmatpush3.bf16.msra.mxu1 %v3699_v47  ;;  %v3739_v47 = vpack.c.bf16 %v2908_v46, %v2907_v45  ;;  %v2946_v46 = vld [vmem:[%s4516_s5 + $0xa0] sm:$0xff] }
 0x7e1   :  { %3363 = vmatmul.mubr.msk.f32.vlgmr.msra.gmra.mrb[12].mxu0 %vm113_vm0, %v4062_v49  ;;  %3708 = vmatprep.subr.bf16.mxu1 %v3707_v52  ;;  %v3711_v49 = vpack.c.bf16 %v2884_v53, %v2883_v51  ;;  %v2914_v51 = vld [vmem:[%s4518_s7 + $0x40] sm:$0xff]  ;;  %v2915_v53 = vld [vmem:[%s4518_s7 + $0x48] sm:$0xff] }
 0x7e2   :  { %3718 = vmatpush3.bf16.msra.mxu0 %v3715_v57 }
 0x7e3   :  { %3374 = vmatmul.mubr.msk.f32.vlgmr.msra.gmra.mrb[16].mxu1 %vm113_vm0, %v3956_v7  ;;  %3720 = vmatprep.subr.bf16.mxu0 %v3719_v59 }
 0x7e4   :  { %3376 = vmatprep.mubr.msk.f32.mxu1 %vm113_vm0, %v3961_v8  ;;  %3710 = vmatpush3.bf16.msra.mxu1 %v3707_v52  ;;  %v3743_v52 = vpack.c.bf16 %v2910_v50, %v2909_v48  ;;  %v1859_v50 = vstv %s1858_s13 }
 0x7e5   :  { %3712 = vmatprep.subr.bf16.mxu1 %v3711_v49 }
 0x7e6   :  { %3722 = vmatpush3.bf16.msra.mxu0 %v3719_v59 }
 0x7e7   :  { %3377 = vmatmul.mubr.msk.f32.gmra.mrb[18].mxu1 %vm113_vm0, %v3970_v9  ;;  %3724 = vmatprep.subr.bf16.mxu0 %v3723_v62 }
 0x7e8   :  { %3714 = vmatpush3.bf16.msra.mxu1 %v3711_v49  ;;  %v3747_v49 = vpack.c.bf16 %v2915_v53, %v2914_v51  ;;  %v1862_v53 = vmul.f32 0.0, %v1859_v50 }
 0x7e9   :  { %3732 = vmatprep.subr.bf16.mxu1 %v3731_v28 }
 0x7ea   :  { %3726 = vmatpush3.bf16.msra.mxu0 %v3723_v62 }
 0x7eb   :  { %3728 = vmatprep.subr.bf16.mxu0 %v3727_v25 }
 0x7ee   :  { %3730 = vmatpush3.bf16.msra.mxu0 %v3727_v25 }
 0x7ef   :  { %3748 = vmatprep.subr.bf16.mxu0 %v3747_v49 }
 0x8b6   :  { %v3375_v10 = vpop.f32.mrb[16].mxu1 }
 0x8b7   :  { %v1345_v12 = vadd.f32 %v3375_v10, %v1256_v3  ;;  %v1325_v13 = vpop.f32.mrb[17].mxu1 }
 0x8b8   :  { %v1344_v14 = vadd.f32 %v1325_v13, %v1255_v11 }
 0x8ba   :  { %v3378_v16 = vpop.f32.mrb[18].mxu1  ;;  %3387 = vmatprep.mubr.msk.f32.mxu1 %vm113_vm0, %v1344_v14  ;;  %v2916_v14 = vld [vmem:[%s4518_s7 + $0x50] sm:$0xff] }
 0x8bb   :  { %v1347_v18 = vadd.f32 %v3378_v16, %v1258_v15  ;;  %v1335_v19 = vpop.f32.mrb[19].mxu1  ;;  %3388 = vmatmul.mubr.msk.f32.vlgmr.msra.gmra.mrb[20].mxu1 %vm113_vm0, %v1345_v12  ;;  %v2917_v15 = vld [vmem:[%s4518_s7 + $0x58] sm:$0xff] }
 0x8bc   :  { %v1346_v22 = vadd.f32 %v1335_v19, %v1257_v17  ;;  %3734 = vmatpush3.bf16.msra.mxu1 %v3731_v28  ;;  %v3751_v16 = vpack.c.bf16 %v2917_v15, %v2916_v14  ;;  %v2921_v17 = vld [vmem:[%s4518_s7 + $0xc0] sm:$0xff]  ;;  %v2923_v28 = vld [vmem:[%s4518_s7 + $0xd0] sm:$0xff] }
 0x8bd   :  { %3736 = vmatprep.subr.bf16.mxu1 %v3735_v44  ;;  %v2911_v19 = vld [vmem:[%s4520_s9 + $0x4] ss:$0 sm:$0xff] }
 0x8be   :  { %3390 = vmatprep.mubr.msk.f32.mxu1 %vm113_vm0, %v1346_v22 }
 0x8bf   :  { %3391 = vmatmul.mubr.msk.f32.gmra.mrb[22].mxu1 %vm113_vm0, %v1347_v18  ;;  %v2922_v18 = vld [vmem:[%s4518_s7 + $0xc8] sm:$0xff] }
 0x8c0   :  { %3738 = vmatpush3.bf16.msra.mxu1 %v3735_v44  ;;  %v2945_v44 = vld [vmem:[%s4516_s5 + $0x98] sm:$0xff] }
 0x8c1   :  { %3740 = vmatprep.subr.bf16.mxu1 %v3739_v47 }
 0x8c4   :  { %3742 = vmatpush3.bf16.msra.mxu1 %v3739_v47  ;;  %v2947_v47 = vld [vmem:[%s4516_s5 + $0xa8] sm:$0xff] }
 0x8c5   :  { %3744 = vmatprep.subr.bf16.mxu1 %v3743_v52  ;;  %v3787_v48 = vpack.c.bf16 %v2947_v47, %v2946_v46 }
 0x8c8   :  { %3746 = vmatpush3.bf16.msra.mxu1 %v3743_v52  ;;  %v1864_v52 = vstv %s2927_s11 }
 0x8c9   :  { %v1865_v51 = vadd.f32 %v1864_v52, %v1859_v50 }
 0x98e   :  { %v3389_v30 = vpop.f32.mrb[20].mxu1 }
 0x98f   :  { %v1442_v31 = vadd.f32 %v3389_v30, %v2885_v29  ;;  %v1436_v32 = vpop.f32.mrb[21].mxu1 }
 0x990   :  { %v1437_v33 = vadd.f32 %v2885_v29, %v1436_v32 }
 0x991   :  { %v1456_v36 = vmax.f32 %v1442_v31, 0.0  ;;  %v2918_v31 = vld [vmem:[%s4520_s9 + $0x8] ss:$0 sm:$0xff] }
 0x992   :  { %v1455_v34 = vmax.f32 %v1437_v33, 0.0  ;;  %v3392_v35 = vpop.f32.mrb[22].mxu1 }
 0x993   :  { %v1452_v37 = vadd.f32 %v3392_v35, %v2885_v29  ;;  %v1446_v38 = vpop.f32.mrb[23].mxu1 }
 0x994   :  { %v1447_v39 = vadd.f32 %v2885_v29, %v1446_v38  ;;  %3409 = vmatprep.mubr.msk.f32.mxu0 %vm371_vm2, %v1455_v34  ;;  %v2924_v29 = vld [vmem:[%s4518_s7 + $0xd8] sm:$0xff]  ;;  %v2934_v38 = vld [vmem:[%s4515_s4 + $0x68] sm:$0xff] }
 0x995   :  { %3410 = vmatmul.mubr.msk.f32.vlgmr.msra.gmra.mrb[14].mxu0 %vm371_vm2, %v1456_v36  ;;  %v1458_v41 = vmax.f32 %v1452_v37, 0.0  ;;  %v3759_v30 = vpack.c.bf16 %v2924_v29, %v2923_v28  ;;  %v2933_v37 = vld [vmem:[%s4515_s4 + $0x60] sm:$0xff]  ;;  %v2958_v28 = vld [vmem:[%s4517_s6 + $0xd8] sm:$0xff] }
 0x996   :  { %v1457_v40 = vmax.f32 %v1447_v39, 0.0  ;;  %3750 = vmatpush3.bf16.msra.mxu0 %v3747_v49  ;;  %v3771_v39 = vpack.c.bf16 %v2934_v38, %v2933_v37  ;;  %v2967_v37 = vld [vmem:[%s4518_s7 + $0x68] sm:$0xff] }
 0x997   :  { %3752 = vmatprep.subr.bf16.mxu0 %v3751_v16 }
 0x998   :  { %3412 = vmatprep.mubr.msk.f32.mxu0 %vm371_vm2, %v1457_v40  ;;  %v2935_v40 = vld [vmem:[%s4515_s4 + $0x70] sm:$0xff] }
 0x999   :  { %3413 = vmatmul.mubr.msk.f32.gmra.mrb[16].mxu0 %vm371_vm2, %v1458_v41  ;;  %v2936_v41 = vld [vmem:[%s4515_s4 + $0x78] sm:$0xff] }
 0x99a   :  { %3754 = vmatpush3.bf16.msra.mxu0 %v3751_v16  ;;  %v3775_v42 = vpack.c.bf16 %v2936_v41, %v2935_v40 }
 0xa68   :  { %v3411_v55 = vpop.f32.mrb[14].mxu0 }
 0xa69   :  { %v1557_v56 = vadd.f32 %v3411_v55, %v2898_v54  ;;  %v1551_v57 = vpop.f32.mrb[15].mxu0 }
 0xa6a   :  { %v1552_v58 = vadd.f32 %v2898_v54, %v1551_v57 }
 0xa6b   :  { %v1571_v60 = vmax.f32 %v1557_v56, 0.0 }
 0xa6c   :  { %v3414_v59 = vpop.f32.mrb[16].mxu0  ;;  %v1570_v63 = vmax.f32 %v1552_v58, 0.0 }
 0xa6d   :  { %v1567_v61 = vadd.f32 %v3414_v59, %v2898_v54  ;;  %v1561_v62 = vpop.f32.mrb[17].mxu0  ;;  %v1575_v3 = vmul.f32 %v1571_v60, %v4030_v20 }
 0xa6e   :  { %v1562_v0 = vadd.f32 %v2898_v54, %v1561_v62  ;;  %v1574_v10 = vmul.f32 %v1570_v63, %v4030_v20  ;;  %v1867_v54 = vadd.f32 %v1864_v52, %v1862_v53 }
 0xa6f   :  { %v1573_v1 = vmax.f32 %v1567_v61, 0.0 }
 0xa70   :  { %v1572_v2 = vmax.f32 %v1562_v0, 0.0 }
 0xa71   :  { %v1577_v6 = vmul.f32 %v1573_v1, %v4032_v21 }
 0xa72   :  { %v1576_v11 = vmul.f32 %v1572_v2, %v4032_v21  ;;  %v2948_v2 = vld [vmem:[%s4516_s5 + $0xb0] sm:$0xff] }
 0xa73   :  { %v1579_v12 = vadd.f32 %v1577_v6, %v1575_v3  ;;  %v2949_v3 = vld [vmem:[%s4516_s5 + $0xb8] sm:$0xff] }
 0xa74   :  { %v1578_v13 = vadd.f32 %v1576_v11, %v1574_v10  ;;  %v3791_v6 = vpack.c.bf16 %v2949_v3, %v2948_v2  ;;  %v2955_v10 = vld [vmem:[%s4517_s6 + $0xc0] sm:$0xff]  ;;  %v2956_v11 = vld [vmem:[%s4517_s6 + $0xc8] sm:$0xff]  ;;  %v2975_v2 = vld [vmem:[%s4518_s7 + $0xf0] sm:$0xff] }
 0xa75   :  { %v2976_v3 = vld [vmem:[%s4518_s7 + $0xf8] sm:$0xff] }
 0xa76   :  { %3431 = vmatprep.mubr.msk.f32.mxu1 %vm371_vm2, %v1578_v13  ;;  %v2937_v13 = vld [vmem:[%s4519_s8 + $0x5] ss:$0 sm:$0xff] }
 0xa77   :  { %3432 = vmatmul.mubr.msk.f32.vlgmr.msra.gmra.mrb[24].mxu1 %vm371_vm2, %v1579_v12  ;;  %v3795_v12 = vpack.c.bf16 %v2956_v11, %v2955_v10  ;;  %v2970_v10 = vld [vmem:[%s4520_s9 + $0x9] ss:$0 sm:$0xff] }
 0xa78   :  { %3464 = vmatprep.mubr.msk.f32.mxu1 %vm113_vm0, %v3949_v5  ;;  %v3755_v5 = vpack.c.bf16 %v2922_v18, %v2921_v17 }
 0xa7a   :  { %3756 = vmatprep.subr.bf16.mxu0 %v3755_v5 }
 0xb4a   :  { %v3433_v22 = vpop.f32.mrb[24].mxu1 }
 0xb4b   :  { %v1672_v23 = vadd.f32 %v3433_v22, %v2911_v19  ;;  %v1666_v24 = vpop.f32.mrb[25].mxu1 }
 0xb4c   :  { %v1667_v25 = vadd.f32 %v2911_v19, %v1666_v24 }
 0xb4d   :  { %v1676_v27 = vmax.f32 %v1672_v23, 0.0 }
 0xb4e   :  { %v1675_v26 = vmax.f32 %v1667_v25, 0.0 }
 0xb50   :  { %3442 = vmatprep.mubr.msk.f32.mxu0 %vm113_vm0, %v1675_v26 }
 0xb51   :  { %3443 = vmatmul.mubr.msk.f32.vlgmr.msra.gmra.mrb[18].mxu0 %vm113_vm0, %v1676_v27  ;;  %v2957_v27 = vld [vmem:[%s4517_s6 + $0xd0] sm:$0xff] }
 0xb52   :  { %3758 = vmatpush3.bf16.msra.mxu0 %v3755_v5  ;;  %v3799_v29 = vpack.c.bf16 %v2958_v28, %v2957_v27  ;;  %v2979_v27 = vld [vmem:[%s4520_s9 + $0xa] ss:$0 sm:$0xff]  ;;  %v2987_v28 = vld [vmem:[%s4518_s7 + $0x120] sm:$0xff] }
 0xb53   :  { %3760 = vmatprep.subr.bf16.mxu0 %v3759_v30 }
 0xb56   :  { %3762 = vmatpush3.bf16.msra.mxu0 %v3759_v30  ;;  %v2959_v30 = vld [vmem:[%s4517_s6 + $0xe0] sm:$0xff] }
 0xc24   :  { %v3444_v32 = vpop.f32.mrb[18].mxu0 }
 0xc25   :  { %v1765_v33 = vadd.f32 %v3444_v32, %v2918_v31  ;;  %v1759_v34 = vpop.f32.mrb[19].mxu0 }
 0xc26   :  { %v1760_v35 = vadd.f32 %v2918_v31, %v1759_v34  ;;  %v2960_v31 = vld [vmem:[%s4517_s6 + $0xe8] sm:$0xff]  ;;  %v2962_v34 = vld [vmem:[%s4517_s6 + $0xf8] sm:$0xff] }
 0xc27   :  { %v1870_v49 = vmul.f32 %v1865_v51, %v1765_v33  ;;  %v1872_v60 = vmul.f32 %v1867_v54, %v1765_v33  ;;  %v3803_v32 = vpack.c.bf16 %v2960_v31, %v2959_v30 }
 0xc28   :  { %3453 = vmatprep.mubr.msk.f32.mxu0 %vm113_vm0, %v1760_v35  ;;  %v3763_v36 = vpack.c.bf16 %v1765_v33, %v1760_v35  ;;  %v1869_v56 = vmul.f32 %v1865_v51, %v1760_v35  ;;  %v1871_v62 = vmul.f32 %v1867_v54, %v1760_v35 }
 0xc29   :  { %3454 = vmatmul.mubr.msk.f32.vlgmr.msra.gmra.mrb[12].mxu0 %vm113_vm0, %v1765_v33  ;;  %v2961_v33 = vld [vmem:[%s4517_s6 + $0xf0] sm:$0xff] }
 0xc2a   :  { %3764 = vmatprep.subr.bf16.mxu1 %v3763_v36  ;;  %v3807_v35 = vpack.c.bf16 %v2962_v34, %v2961_v33 }
 0xc2b   :  { %3766 = vmatpush3.bf16.msra.mxu1 %v3763_v36 }
 0xc2c   :  { %3768 = vmatprep.subr.bf16.mxu1 %v3763_v36 }
 0xc2f   :  { %3770 = vmatpush3.bf16.msra.mxu1 %v3763_v36  ;;  %v2966_v36 = vld [vmem:[%s4518_s7 + $0x60] sm:$0xff] }
 0xc30   :  { %3772 = vmatprep.subr.bf16.mxu1 %v3771_v39  ;;  %v3811_v38 = vpack.c.bf16 %v2967_v37, %v2966_v36  ;;  %v2990_v36 = vld [vmem:[%s4518_s7 + $0x138] sm:$0xff] }
 0xc32   :  { %3465 = vmatmul.mubr.msk.f32.vlgmr.msra.gmra.mrb[26].mxu1 %vm113_vm0, %v3956_v7  ;;  %v2942_v7 = vld [vmem:[%s4516_s5 + $0x80] sm:$0xff] }
 0xc33   :  { %3467 = vmatprep.mubr.msk.f32.mxu1 %vm113_vm0, %v3961_v8  ;;  %3774 = vmatpush3.bf16.msra.mxu1 %v3771_v39  ;;  %v2943_v8 = vld [vmem:[%s4516_s5 + $0x88] sm:$0xff]  ;;  %v2950_v39 = vld [vmem:[%s4519_s8 + $0x6] ss:$0 sm:$0xff] }
 0xc34   :  { %3776 = vmatprep.subr.bf16.mxu1 %v3775_v42  ;;  %v3779_v43 = vpack.c.bf16 %v2943_v8, %v2942_v7 }
 0xc36   :  { %3468 = vmatmul.mubr.msk.f32.gmra.mrb[28].mxu1 %vm113_vm0, %v3970_v9  ;;  %v2944_v9 = vld [vmem:[%s4516_s5 + $0x90] sm:$0xff]  ;;  %3780 = vmatprep.subr.bf16.mxu0 %v3779_v43 }
 0xc37   :  { %3778 = vmatpush3.bf16.msra.mxu1 %v3775_v42  ;;  %v3783_v45 = vpack.c.bf16 %v2945_v44, %v2944_v9  ;;  %3782 = vmatpush3.bf16.msra.mxu0 %v3779_v43 }
 0xc38   :  { %3796 = vmatprep.subr.bf16.mxu1 %v3795_v12 }
 0xc39   :  { %3784 = vmatprep.subr.bf16.mxu0 %v3783_v45 }
 0xc3b   :  { %3786 = vmatpush3.bf16.msra.mxu0 %v3783_v45 }
 0xc3c   :  { %3788 = vmatprep.subr.bf16.mxu0 %v3787_v48 }
 0xc3f   :  { %3790 = vmatpush3.bf16.msra.mxu0 %v3787_v48 }
 0xc40   :  { %3792 = vmatprep.subr.bf16.mxu0 %v3791_v6 }
 0xc43   :  { %3794 = vmatpush3.bf16.msra.mxu0 %v3791_v6  ;;  %v3823_v6 = vpack.c.bf16 %v2976_v3, %v2975_v2 }
 0xc44   :  { %3812 = vmatprep.subr.bf16.mxu0 %v3811_v38 }
 0xd05   :  { %v3466_v55 = vpop.f32.mrb[26].mxu1 }
 0xd06   :  { %v1959_v57 = vadd.f32 %v3466_v55, %v1870_v49  ;;  %v1939_v58 = vpop.f32.mrb[27].mxu1  ;;  %v2968_v55 = vld [vmem:[%s4518_s7 + $0x70] sm:$0xff] }
 0xd07   :  { %v1958_v59 = vadd.f32 %v1939_v58, %v1869_v56  ;;  %v2969_v56 = vld [vmem:[%s4518_s7 + $0x78] sm:$0xff] }
 0xd09   :  { %v3469_v61 = vpop.f32.mrb[28].mxu1  ;;  %3478 = vmatprep.mubr.msk.f32.mxu1 %vm113_vm0, %v1958_v59  ;;  %v2963_v59 = vld [vmem:[%s4520_s9 + $0x5] ss:$0 sm:$0xff] }
 0xd0a   :  { %v1961_v63 = vadd.f32 %v3469_v61, %v1872_v60  ;;  %v1949_v0 = vpop.f32.mrb[29].mxu1  ;;  %3479 = vmatmul.mubr.msk.f32.vlgmr.msra.gmra.mrb[30].mxu1 %vm113_vm0, %v1959_v57  ;;  %v3815_v57 = vpack.c.bf16 %v2969_v56, %v2968_v55 }
 0xd0b   :  { %v1960_v1 = vadd.f32 %v1949_v0, %v1871_v62  ;;  %3798 = vmatpush3.bf16.msra.mxu1 %v3795_v12 }
 0xd0c   :  { %3800 = vmatprep.subr.bf16.mxu1 %v3799_v29 }
 0xd0d   :  { %3481 = vmatprep.mubr.msk.f32.mxu1 %vm113_vm0, %v1960_v1 }
 0xd0e   :  { %3482 = vmatmul.mubr.msk.f32.gmra.mrb[32].mxu1 %vm113_vm0, %v1961_v63 }
 0xd0f   :  { %3802 = vmatpush3.bf16.msra.mxu1 %v3799_v29  ;;  %v2988_v29 = vld [vmem:[%s4518_s7 + $0x128] sm:$0xff] }
 0xd10   :  { %3804 = vmatprep.subr.bf16.mxu1 %v3803_v32  ;;  %v3837_v33 = vpack.c.bf16 %v2988_v29, %v2987_v28 }
 0xd13   :  { %3806 = vmatpush3.bf16.msra.mxu1 %v3803_v32 }
 0xd14   :  { %3808 = vmatprep.subr.bf16.mxu1 %v3807_v35 }
 0xd17   :  { %3810 = vmatpush3.bf16.msra.mxu1 %v3807_v35  ;;  %v2989_v35 = vld [vmem:[%s4518_s7 + $0x130] sm:$0xff] }
 0xd18   :  { %v3840_v37 = vpack.c.bf16 %v2990_v36, %v2989_v35 }
 0xddd   :  { %v3480_v14 = vpop.f32.mrb[30].mxu1 }
 0xdde   :  { %v2056_v15 = vadd.f32 %v3480_v14, %v2937_v13  ;;  %v2050_v16 = vpop.f32.mrb[31].mxu1 }
 0xddf   :  { %v2051_v17 = vadd.f32 %v2937_v13, %v2050_v16 }
 0xde0   :  { %v2070_v19 = vmax.f32 %v2056_v15, 0.0  ;;  %v3874_v15 = vmov 0.0|0.0  }
 0xde1   :  { %v2069_v18 = vmax.f32 %v2051_v17, 0.0  ;;  %v3483_v5 = vpop.f32.mrb[32].mxu1  ;;  %3827 = vmatprep.subr.bf16.mxu1 %v3874_v15 }
 0xde2   :  { %v2066_v22 = vadd.f32 %v3483_v5, %v2937_v13  ;;  %v2060_v23 = vpop.f32.mrb[33].mxu1  ;;  %v2982_v5 = vld [vmem:[%s4518_s7 + $0x108] sm:$0xff] }
 0xde3   :  { %v2061_v24 = vadd.f32 %v2937_v13, %v2060_v23  ;;  %3500 = vmatprep.mubr.msk.f32.mxu0 %vm371_vm2, %v2069_v18  ;;  %v2981_v18 = vld [vmem:[%s4518_s7 + $0x100] sm:$0xff] }
 0xde4   :  { %3501 = vmatmul.mubr.msk.f32.vlgmr.msra.gmra.mrb[20].mxu0 %vm371_vm2, %v2070_v19  ;;  %v2072_v26 = vmax.f32 %v2066_v22, 0.0  ;;  %v52_v22 = vld [vmem:[%s4514_s3] sm:$0x3]  ;;  %v3831_v23 = vpack.c.bf16 %v2982_v5, %v2981_v18 }
 0xde5   :  { %v2071_v25 = vmax.f32 %v2061_v24, 0.0  ;;  %3814 = vmatpush3.bf16.msra.mxu0 %v3811_v38  ;;  %v2983_v24 = vld [vmem:[%s4518_s7 + $0x110] sm:$0xff]  ;;  %v2993_v38 = vld [vmem:[%s4518_s7 + $0x140] sm:$0xff] }
 0xde6   :  { %3816 = vmatprep.subr.bf16.mxu0 %v3815_v57 }
 0xde7   :  { %3503 = vmatprep.mubr.msk.f32.mxu0 %vm371_vm2, %v2071_v25  ;;  %v2984_v25 = vld [vmem:[%s4518_s7 + $0x118] sm:$0xff] }
 0xde8   :  { %3504 = vmatmul.mubr.msk.f32.gmra.mrb[22].mxu0 %vm371_vm2, %v2072_v26  ;;  %v3834_v26 = vpack.c.bf16 %v2984_v25, %v2983_v24 }
 0xde9   :  { %3818 = vmatpush3.bf16.msra.mxu0 %v3815_v57 }
 0xeb7   :  { %v3502_v40 = vpop.f32.mrb[20].mxu0 }
 0xeb8   :  { %v2171_v41 = vadd.f32 %v3502_v40, %v2950_v39  ;;  %v2165_v42 = vpop.f32.mrb[21].mxu0  ;;  %v2985_v40 = vld [vmem:[%s4520_s9 + $0xb] ss:$0 sm:$0xff] }
 0xeb9   :  { %v2166_v7 = vadd.f32 %v2950_v39, %v2165_v42 }
 0xeba   :  { %v2185_v9 = vmax.f32 %v2171_v41, 0.0 }
 0xebb   :  { %v3505_v8 = vpop.f32.mrb[22].mxu0  ;;  %v2184_v45 = vmax.f32 %v2166_v7, 0.0 }
 0xebc   :  { %v2181_v43 = vadd.f32 %v3505_v8, %v2950_v39  ;;  %v2175_v44 = vpop.f32.mrb[23].mxu0  ;;  %v2189_v50 = vmul.f32 %v2185_v9, %v4030_v20  ;;  %v2995_v9 = vld [vmem:[%s4518_s7 + $0x150] sm:$0xff] }
 0xebd   :  { %v2176_v46 = vadd.f32 %v2950_v39, %v2175_v44  ;;  %v2188_v51 = vmul.f32 %v2184_v45, %v4030_v20  ;;  %v2973_v20 = vld [vmem:[%s4518_s7 + $0xe0] sm:$0xff]  ;;  %v2994_v39 = vld [vmem:[%s4518_s7 + $0x148] sm:$0xff] }
 0xebe   :  { %v2187_v47 = vmax.f32 %v2181_v43, 0.0  ;;  %v2996_v43 = vld [vmem:[%s4518_s7 + $0x158] sm:$0xff]  ;;  %v2991_v45 = vld [vmem:[%s4520_s9 + $0xc] ss:$0 sm:$0xff] }
 0xebf   :  { %v2186_v48 = vmax.f32 %v2176_v46, 0.0  ;;  %v3846_v44 = vpack.c.bf16 %v2996_v43, %v2995_v9 }
 0xec0   :  { %v2191_v52 = vmul.f32 %v2187_v47, %v4032_v21 }
 0xec1   :  { %v2190_v53 = vmul.f32 %v2186_v48, %v4032_v21  ;;  %v2974_v21 = vld [vmem:[%s4518_s7 + $0xe8] sm:$0xff] }
 0xec2   :  { %v2193_v49 = vadd.f32 %v2191_v52, %v2189_v50  ;;  %v3819_v58 = vpack.c.bf16 %v2974_v21, %v2973_v20  ;;  %v2997_v52 = vld [vmem:[%s4520_s9 + $0xd] ss:$0 sm:$0xff] }
 0xec3   :  { %v2192_v54 = vadd.f32 %v2190_v53, %v2188_v51 }
 0xec4   :  { %3820 = vmatprep.subr.bf16.mxu0 %v3819_v58 }
 0xec5   :  { %3522 = vmatprep.mubr.msk.f32.mxu1 %vm371_vm2, %v2192_v54 }
 0xec6   :  { %3523 = vmatmul.mubr.msk.f32.vlgmr.msra.gmra.mrb[34].mxu1 %vm371_vm2, %v2193_v49 }
 0xec7   :  { %3551 = vmatprep.mubr.msk.f32.mxu1 %vm3875_vm3, %v3873_v4 }
 0xf99   :  { %v3524_v60 = vpop.f32.mrb[34].mxu1 }
 0xf9a   :  { %v2286_v61 = vadd.f32 %v3524_v60, %v2963_v59  ;;  %v2280_v62 = vpop.f32.mrb[35].mxu1 }
 0xf9b   :  { %v2281_v63 = vadd.f32 %v2963_v59, %v2280_v62 }
 0xf9c   :  { %v2290_v1 = vmax.f32 %v2286_v61, 0.0 }
 0xf9d   :  { %v2289_v0 = vmax.f32 %v2281_v63, 0.0 }
 0xf9f   :  { %3533 = vmatprep.mubr.msk.f32.mxu0 %vm113_vm0, %v2289_v0 }
 0xfa0   :  { %3534 = vmatmul.mubr.msk.f32.vlgmr.msra.gmra.mrb[24].mxu0 %vm113_vm0, %v2290_v1 }
 0xfa1   :  { %3822 = vmatpush3.bf16.msra.mxu0 %v3819_v58 }
 0xfa2   :  { %3824 = vmatprep.subr.bf16.mxu0 %v3823_v6 }
 0xfa5   :  { %3826 = vmatpush3.bf16.msra.mxu0 %v3823_v6 }
 0xfa6   :  { %3842 = vmatprep.subr.bf16.mxu0 %v3874_v15 }
0x1073   :  { %v3535_v11 = vpop.f32.mrb[24].mxu0 }
0x1074   :  { %v2373_v12 = vpop.f32.mrb[25].mxu0  ;;  %v2379_v14 = vadd.f32 %v3535_v11, %v2970_v10 }
0x1075   :  { %v2374_v13 = vadd.f32 %v2970_v10, %v2373_v12 }
0x1077   :  { %3544 = vmatprep.mubr.msk.f32.mxu0 %vm113_vm0, %v2374_v13 }
0x1078   :  { %3545 = vmatmul.mubr.msk.f32.vlgmr.msra.gmra.mrb[12].mxu0 %vm113_vm0, %v2379_v14 }
0x1079   :  { %3584 = vmatprep.mubr.msk.f32.mxu0 %vm3875_vm3, %v3873_v4 }
0x114b   :  { %v3546_v16 = vpop.f32.mrb[12].mxu0 }
0x114c   :  { %v2459_v17 = vpop.f32.mrb[13].mxu0 }
0x114d   :  { %v3828_v19 = vpack.c.bf16 %v3546_v16, %v2459_v17 }
0x114f   :  { %3829 = vmatpush3.bf16.msra.mxu1 %v3828_v19 }
0x1150   :  { %3830 = vmatprep.subr.bf16.mxu1 %v3874_v15 }
0x1152   :  { %3552 = vmatmul.mubr.msk.f32.vlgmr.msra.gmra.mrb[36].mxu1 %vm2475_vm4, %v52_v22 }
0x1153   :  { %3832 = vmatpush3.bf16.msra.mxu1 %v3831_v23  ;;  %3562 = vmatprep.mubr.msk.f32.mxu1 %vm3875_vm3, %v3873_v4 }
0x1154   :  { %3833 = vmatprep.subr.bf16.mxu1 %v3874_v15 }
0x1157   :  { %3835 = vmatpush3.bf16.msra.mxu1 %v3834_v26 }
0x1158   :  { %3836 = vmatprep.subr.bf16.mxu1 %v3874_v15 }
0x1225   :  { %v2545_v30 = vpop.f32.mrb[36].mxu1 }
0x1226   :  { %v2546_v31 = vadd.f32 %v2979_v27, %v2545_v30  ;;  %v3553_v32 = vpop.f32.mrb[37].mxu1 }
0x1228   :  { %v2549_v34 = vmax.f32 %v2546_v31, 0.0 }
0x122a   :  { %3563 = vmatmul.mubr.msk.f32.vlgmr.msra.gmra.mrb[38].mxu1 %vm113_vm0, %v2549_v34 }
0x122b   :  { %3838 = vmatpush3.bf16.msra.mxu1 %v3837_v33  ;;  %3573 = vmatprep.mubr.msk.f32.mxu1 %vm3875_vm3, %v3873_v4  ;;  %v3843_v4 = vpack.c.bf16 %v2994_v39, %v2993_v38 }
0x122c   :  { %3839 = vmatprep.subr.bf16.mxu1 %v3874_v15 }
0x122d   :  { %3844 = vmatpush3.bf16.msra.mxu0 %v3843_v4 }
0x122e   :  { %3845 = vmatprep.subr.bf16.mxu0 %v3874_v15 }
0x122f   :  { %3841 = vmatpush3.bf16.msra.mxu1 %v3840_v37 }
0x1231   :  { %3847 = vmatpush3.bf16.msra.mxu0 %v3846_v44 }
0x12fd   :  { %v2629_v41 = vpop.f32.mrb[38].mxu1 }
0x12fe   :  { %v2630_v42 = vadd.f32 %v2985_v40, %v2629_v41  ;;  %v3564_v7 = vpop.f32.mrb[39].mxu1 }
0x1300   :  { %v2633_v8 = vmax.f32 %v2630_v42, 0.0 }
0x1302   :  { %3574 = vmatmul.mubr.msk.f32.vlgmr.msra.gmra.mrb[40].mxu1 %vm113_vm0, %v2633_v8 }
0x13d5   :  { %v2713_v46 = vpop.f32.mrb[40].mxu1 }
0x13d6   :  { %v2714_v47 = vadd.f32 %v2991_v45, %v2713_v46  ;;  %v3575_v48 = vpop.f32.mrb[41].mxu1 }
0x13d8   :  { %v2717_v50 = vmax.f32 %v2714_v47, 0.0 }
0x13da   :  { %3585 = vmatmul.mubr.msk.f32.vlgmr.msra.gmra.mrb[26].mxu0 %vm113_vm0, %v2717_v50 }
0x14ad   :  { %v2797_v51 = vpop.f32.mrb[26].mxu0 }
0x14ae   :  { %v2798_v53 = vadd.f32 %v2997_v52, %v2797_v51  ;;  %v3586_v49 = vpop.f32.mrb[27].mxu0 }
0x14b0   :  { %2802 = vst.msk [vmem:[%s4521_s10] sm:$0x3] %vm2801_vm5, %v2798_v53 }
0x14b1   :  { %2807 = vsyncpa [#allocation3], 1 }

</bundles_post_ra>
